<compile_context>
chip_gen: v7x
topology: tpu7x:2x2x1
jax: 0.10.0
libtpu: 0.0.40
codegen_flags: <defaults>
</compile_context>

<pallas_src>
import jax
import jax.numpy as jnp
from jax.experimental import pallas as pl

NUM_NODES = 4


def _highway(inp, carry, w_t, w_g, b_t, b_g):
    """Un-fused highway connection (used only by the pure-JAX reference)."""
    tr = jnp.tanh(jnp.dot(inp, w_t, preferred_element_type=jnp.float32) + b_t)
    gate = jax.nn.sigmoid(
        jnp.dot(inp, w_g, preferred_element_type=jnp.float32) + b_g)
    return gate * tr + (1.0 - gate) * carry


def searchspace_kernel(x_ref, w0_ref, b0_ref, w12_ref, b12_ref, w3_ref, b3_ref,
                       out_ref):
    """Single invocation: whole sequence + packed weights resident in VMEM.

    The time loop is fully unrolled inside the kernel (S is small and static),
    so there is exactly one HBM->VMEM load per operand and one VMEM->HBM
    writeback of the (S, B, H) output slab.
    """
    S, B, H = x_ref.shape

    # Hoist the time-invariant packed parameters out of the loop (read once).
    w0, b0 = w0_ref[...], b0_ref[...]        # (H, 2H), (1, 2H)
    w12, b12 = w12_ref[...], b12_ref[...]    # (H, 4H), (1, 4H)
    w3, b3 = w3_ref[...], b3_ref[...]        # (H, 2H), (1, 2H)

    # hidden_state is None in the reference forward -> zeros at t == 0
    h = jnp.zeros((B, H), jnp.float32)

    for t in range(S):                       # static trip count, fully unrolled
        x_t = x_ref[t]                       # (B, H)

        # node 0: fused [W_t | W_g] matmul, carry = h_{t-1}
        z0 = jnp.dot(x_t, w0, preferred_element_type=jnp.float32) + b0
        g0 = jax.nn.sigmoid(z0[:, H:])
        n0 = g0 * jnp.tanh(z0[:, :H]) + (1.0 - g0) * h

        # nodes 1 & 2: both consume n0 -> one (B,H)@(H,4H) lane-full matmul
        z12 = jnp.dot(n0, w12, preferred_element_type=jnp.float32) + b12
        g1 = jax.nn.sigmoid(z12[:, H:2 * H])
        g2 = jax.nn.sigmoid(z12[:, 3 * H:4 * H])
        n1 = g1 * jnp.tanh(z12[:, 0:H]) + (1.0 - g1) * n0
        n2 = g2 * jnp.tanh(z12[:, 2 * H:3 * H]) + (1.0 - g2) * n0

        # node 3: consumes n1 (fused [W_t | W_g])
        z3 = jnp.dot(n1, w3, preferred_element_type=jnp.float32) + b3
        g3 = jax.nn.sigmoid(z3[:, H:])
        n3 = g3 * jnp.tanh(z3[:, :H]) + (1.0 - g3) * n1

        # mean over loose ends {node2, node3}
        h = (n2 + n3) * 0.5
        out_ref[t] = h.astype(out_ref.dtype)


def _pack_params(wt, wg, bt, bg):
    """Pure concat/reshape weight packing (done once, outside the kernel)."""
    w0 = jnp.concatenate([wt[0], wg[0]], axis=1)                   # (H, 2H)
    b0 = jnp.concatenate([bt[0], bg[0]], axis=1)                   # (1, 2H)
    w12 = jnp.concatenate([wt[1], wg[1], wt[2], wg[2]], axis=1)    # (H, 4H)
    b12 = jnp.concatenate([bt[1], bg[1], bt[2], bg[2]], axis=1)    # (1, 4H)
    w3 = jnp.concatenate([wt[3], wg[3]], axis=1)                   # (H, 2H)
    b3 = jnp.concatenate([bt[3], bg[3]], axis=1)                   # (1, 2H)
    return w0, b0, w12, b12, w3, b3


def searchspace_forward(x, wt, wg, bt, bg):
    """x: (S, B, H) float32; returns (S, B, H)."""
    S, B, H = x.shape
    w0, b0, w12, b12, w3, b3 = _pack_params(wt, wg, bt, bg)
    # No grid: every operand is a full-array VMEM block (total footprint well
    # under 100 KiB, fits any TPU generation's VMEM with huge headroom).
    return pl.pallas_call(
        searchspace_kernel,
        out_shape=jax.ShapeDtypeStruct((S, B, H), x.dtype),
    )(x, w0, b0, w12, b12, w3, b3)


def searchspace_reference(x, wt, wg, bt, bg):
    """Pure-JAX reference (lax.scan over time, un-fused weights)."""
    S, B, H = x.shape

    def cell(h_prev, x_t):
        def hw(n, inp, carry):
            return _highway(inp, carry, wt[n], wg[n], bt[n], bg[n])
        n0 = hw(0, x_t, h_prev)
        n1 = hw(1, n0, n0)
        n2 = hw(2, n0, n0)
        n3 = hw(3, n1, n1)
        h_new = (n2 + n3) * 0.5
        return h_new, h_new

    h0 = jnp.zeros((B, H), jnp.float32)
    _, outs = jax.lax.scan(cell, h0, x)
    return outs


if __name__ == "__main__":
    SEQ, BATCH, HIDDEN = 8, 8, 32   # input_size == hidden_size == 32

    key = jax.random.PRNGKey(0)
    k_x, k_wt, k_wg, k_bt, k_bg = jax.random.split(key, 5)

    x = jax.random.normal(k_x, (SEQ, BATCH, HIDDEN), dtype=jnp.float32)

    # Deterministic synthetic parameters (stacked per-node highway weights).
    wt = 0.1 * jax.random.normal(k_wt, (NUM_NODES, HIDDEN, HIDDEN), jnp.float32)
    wg = 0.1 * jax.random.normal(k_wg, (NUM_NODES, HIDDEN, HIDDEN), jnp.float32)
    bt = 0.1 * jax.random.normal(k_bt, (NUM_NODES, 1, HIDDEN), jnp.float32)
    bg = 0.1 * jax.random.normal(k_bg, (NUM_NODES, 1, HIDDEN), jnp.float32)

    out = searchspace_forward(x, wt, wg, bt, bg)
    out = jax.block_until_ready(out)

    ref = jax.block_until_ready(searchspace_reference(x, wt, wg, bt, bg))
    assert out.shape == (SEQ, BATCH, HIDDEN)
    assert jnp.allclose(out, ref, atol=1e-5, rtol=1e-5), "mismatch vs JAX reference"

    print("KERNEL_OK")
</pallas_src>

<mosaic_0001>
module attributes {stable_mosaic.version = 11 : i64} {
  func.func @searchspace_kernel(%arg0: memref<8x8x32xf32, #tpu.memory_space<vmem>>, %arg1: memref<32x64xf32, #tpu.memory_space<vmem>>, %arg2: memref<1x64xf32, #tpu.memory_space<vmem>>, %arg3: memref<32x128xf32, #tpu.memory_space<vmem>>, %arg4: memref<1x128xf32, #tpu.memory_space<vmem>>, %arg5: memref<32x64xf32, #tpu.memory_space<vmem>>, %arg6: memref<1x64xf32, #tpu.memory_space<vmem>>, %arg7: memref<8x8x32xf32, #tpu.memory_space<vmem>>) attributes {dimension_semantics = [], scalar_prefetch = 0 : i64, scratch_operands = 0 : i64, tpu.core_type = #tpu.core_type<tc>} {
    %c0 = arith.constant 0 : index
    %c0_0 = arith.constant 0 : index
    %0 = vector.load %arg1[%c0, %c0_0] : memref<32x64xf32, #tpu.memory_space<vmem>>, vector<32x64xf32>
    %c0_1 = arith.constant 0 : index
    %c0_2 = arith.constant 0 : index
    %1 = vector.load %arg2[%c0_1, %c0_2] : memref<1x64xf32, #tpu.memory_space<vmem>>, vector<1x64xf32>
    %c0_3 = arith.constant 0 : index
    %c0_4 = arith.constant 0 : index
    %2 = vector.load %arg3[%c0_3, %c0_4] : memref<32x128xf32, #tpu.memory_space<vmem>>, vector<32x128xf32>
    %c0_5 = arith.constant 0 : index
    %c0_6 = arith.constant 0 : index
    %3 = vector.load %arg4[%c0_5, %c0_6] : memref<1x128xf32, #tpu.memory_space<vmem>>, vector<1x128xf32>
    %c0_7 = arith.constant 0 : index
    %c0_8 = arith.constant 0 : index
    %4 = vector.load %arg5[%c0_7, %c0_8] : memref<32x64xf32, #tpu.memory_space<vmem>>, vector<32x64xf32>
    %c0_9 = arith.constant 0 : index
    %c0_10 = arith.constant 0 : index
    %5 = vector.load %arg6[%c0_9, %c0_10] : memref<1x64xf32, #tpu.memory_space<vmem>>, vector<1x64xf32>
    %cst = arith.constant 0.000000e+00 : f32
    %6 = vector.broadcast %cst : f32 to vector<8x32xf32>
    %c0_11 = arith.constant 0 : index
    %c0_12 = arith.constant 0 : index
    %c0_13 = arith.constant 0 : index
    %7 = vector.load %arg0[%c0_11, %c0_12, %c0_13] : memref<8x8x32xf32, #tpu.memory_space<vmem>>, vector<1x8x32xf32>
    %8 = vector.shape_cast %7 : vector<1x8x32xf32> to vector<8x32xf32>
    %cst_14 = arith.constant dense<0.000000e+00> : vector<8x64xf32>
    %9 = tpu.matmul %8, %0, %cst_14 {dimension_numbers = #tpu.dot_dimension_numbers<[1], [0], [0], [1], [0, 0, 1, 1], [], []>} : vector<8x32xf32>, vector<32x64xf32>, vector<8x64xf32> -> vector<8x64xf32>
    %10 = vector.broadcast %1 : vector<1x64xf32> to vector<8x64xf32>
    %11 = arith.addf %9, %10 : vector<8x64xf32>
    %12 = vector.extract_strided_slice %11 {offsets = [0, 32], sizes = [8, 32], strides = [1, 1]} : vector<8x64xf32> to vector<8x32xf32>
    %13 = arith.negf %12 : vector<8x32xf32>
    %14 = math.exp %13 : vector<8x32xf32>
    %cst_15 = arith.constant 1.000000e+00 : f32
    %15 = vector.broadcast %cst_15 : f32 to vector<8x32xf32>
    %16 = arith.addf %15, %14 : vector<8x32xf32>
    %17 = arith.divf %15, %16 : vector<8x32xf32>
    %18 = vector.extract_strided_slice %11 {offsets = [0, 0], sizes = [8, 32], strides = [1, 1]} : vector<8x64xf32> to vector<8x32xf32>
    %19 = math.tanh %18 : vector<8x32xf32>
    %20 = arith.mulf %17, %19 : vector<8x32xf32>
    %cst_16 = arith.constant 1.000000e+00 : f32
    %21 = vector.broadcast %cst_16 : f32 to vector<8x32xf32>
    %22 = arith.subf %21, %17 : vector<8x32xf32>
    %23 = arith.mulf %22, %6 : vector<8x32xf32>
    %24 = arith.addf %20, %23 : vector<8x32xf32>
    %cst_17 = arith.constant dense<0.000000e+00> : vector<8x128xf32>
    %25 = tpu.matmul %24, %2, %cst_17 {dimension_numbers = #tpu.dot_dimension_numbers<[1], [0], [0], [1], [0, 0, 1, 1], [], []>} : vector<8x32xf32>, vector<32x128xf32>, vector<8x128xf32> -> vector<8x128xf32>
    %26 = vector.broadcast %3 : vector<1x128xf32> to vector<8x128xf32>
    %27 = arith.addf %25, %26 : vector<8x128xf32>
    %28 = vector.extract_strided_slice %27 {offsets = [0, 32], sizes = [8, 32], strides = [1, 1]} : vector<8x128xf32> to vector<8x32xf32>
    %29 = arith.negf %28 : vector<8x32xf32>
    %30 = math.exp %29 : vector<8x32xf32>
    %cst_18 = arith.constant 1.000000e+00 : f32
    %31 = vector.broadcast %cst_18 : f32 to vector<8x32xf32>
    %32 = arith.addf %31, %30 : vector<8x32xf32>
    %33 = arith.divf %31, %32 : vector<8x32xf32>
    %34 = vector.extract_strided_slice %27 {offsets = [0, 96], sizes = [8, 32], strides = [1, 1]} : vector<8x128xf32> to vector<8x32xf32>
    %35 = arith.negf %34 : vector<8x32xf32>
    %36 = math.exp %35 : vector<8x32xf32>
    %cst_19 = arith.constant 1.000000e+00 : f32
    %37 = vector.broadcast %cst_19 : f32 to vector<8x32xf32>
    %38 = arith.addf %37, %36 : vector<8x32xf32>
    %39 = arith.divf %37, %38 : vector<8x32xf32>
    %40 = vector.extract_strided_slice %27 {offsets = [0, 0], sizes = [8, 32], strides = [1, 1]} : vector<8x128xf32> to vector<8x32xf32>
    %41 = math.tanh %40 : vector<8x32xf32>
    %42 = arith.mulf %33, %41 : vector<8x32xf32>
    %cst_20 = arith.constant 1.000000e+00 : f32
    %43 = vector.broadcast %cst_20 : f32 to vector<8x32xf32>
    %44 = arith.subf %43, %33 : vector<8x32xf32>
    %45 = arith.mulf %44, %24 : vector<8x32xf32>
    %46 = arith.addf %42, %45 : vector<8x32xf32>
    %47 = vector.extract_strided_slice %27 {offsets = [0, 64], sizes = [8, 32], strides = [1, 1]} : vector<8x128xf32> to vector<8x32xf32>
    %48 = math.tanh %47 : vector<8x32xf32>
    %49 = arith.mulf %39, %48 : vector<8x32xf32>
    %cst_21 = arith.constant 1.000000e+00 : f32
    %50 = vector.broadcast %cst_21 : f32 to vector<8x32xf32>
    %51 = arith.subf %50, %39 : vector<8x32xf32>
    %52 = arith.mulf %51, %24 : vector<8x32xf32>
    %53 = arith.addf %49, %52 : vector<8x32xf32>
    %cst_22 = arith.constant dense<0.000000e+00> : vector<8x64xf32>
    %54 = tpu.matmul %46, %4, %cst_22 {dimension_numbers = #tpu.dot_dimension_numbers<[1], [0], [0], [1], [0, 0, 1, 1], [], []>} : vector<8x32xf32>, vector<32x64xf32>, vector<8x64xf32> -> vector<8x64xf32>
    %55 = vector.broadcast %5 : vector<1x64xf32> to vector<8x64xf32>
    %56 = arith.addf %54, %55 : vector<8x64xf32>
    %57 = vector.extract_strided_slice %56 {offsets = [0, 32], sizes = [8, 32], strides = [1, 1]} : vector<8x64xf32> to vector<8x32xf32>
    %58 = arith.negf %57 : vector<8x32xf32>
    %59 = math.exp %58 : vector<8x32xf32>
    %cst_23 = arith.constant 1.000000e+00 : f32
    %60 = vector.broadcast %cst_23 : f32 to vector<8x32xf32>
    %61 = arith.addf %60, %59 : vector<8x32xf32>
    %62 = arith.divf %60, %61 : vector<8x32xf32>
    %63 = vector.extract_strided_slice %56 {offsets = [0, 0], sizes = [8, 32], strides = [1, 1]} : vector<8x64xf32> to vector<8x32xf32>
    %64 = math.tanh %63 : vector<8x32xf32>
    %65 = arith.mulf %62, %64 : vector<8x32xf32>
    %cst_24 = arith.constant 1.000000e+00 : f32
    %66 = vector.broadcast %cst_24 : f32 to vector<8x32xf32>
    %67 = arith.subf %66, %62 : vector<8x32xf32>
    %68 = arith.mulf %67, %46 : vector<8x32xf32>
    %69 = arith.addf %65, %68 : vector<8x32xf32>
    %70 = arith.addf %53, %69 : vector<8x32xf32>
    %cst_25 = arith.constant 5.000000e-01 : f32
    %71 = vector.broadcast %cst_25 : f32 to vector<8x32xf32>
    %72 = arith.mulf %70, %71 : vector<8x32xf32>
    %c0_26 = arith.constant 0 : index
    %c0_27 = arith.constant 0 : index
    %c0_28 = arith.constant 0 : index
    %73 = vector.load %arg7[%c0_26, %c0_27, %c0_28] : memref<8x8x32xf32, #tpu.memory_space<vmem>>, vector<1x8x32xf32>
    %74 = vector.shape_cast %73 : vector<1x8x32xf32> to vector<8x32xf32>
    %75 = vector.shape_cast %72 : vector<8x32xf32> to vector<1x8x32xf32>
    tpu.vector_store %arg7[%c0_26, %c0_27, %c0_28], %75 {strides = array<i32>} : memref<8x8x32xf32, #tpu.memory_space<vmem>>, vector<1x8x32xf32>,
    %c1 = arith.constant 1 : index
    %c0_29 = arith.constant 0 : index
    %c0_30 = arith.constant 0 : index
    %76 = vector.load %arg0[%c1, %c0_29, %c0_30] : memref<8x8x32xf32, #tpu.memory_space<vmem>>, vector<1x8x32xf32>
    %77 = vector.shape_cast %76 : vector<1x8x32xf32> to vector<8x32xf32>
    %cst_31 = arith.constant dense<0.000000e+00> : vector<8x64xf32>
    %78 = tpu.matmul %77, %0, %cst_31 {dimension_numbers = #tpu.dot_dimension_numbers<[1], [0], [0], [1], [0, 0, 1, 1], [], []>} : vector<8x32xf32>, vector<32x64xf32>, vector<8x64xf32> -> vector<8x64xf32>
    %79 = vector.broadcast %1 : vector<1x64xf32> to vector<8x64xf32>
    %80 = arith.addf %78, %79 : vector<8x64xf32>
    %81 = vector.extract_strided_slice %80 {offsets = [0, 32], sizes = [8, 32], strides = [1, 1]} : vector<8x64xf32> to vector<8x32xf32>
    %82 = arith.negf %81 : vector<8x32xf32>
    %83 = math.exp %82 : vector<8x32xf32>
    %cst_32 = arith.constant 1.000000e+00 : f32
    %84 = vector.broadcast %cst_32 : f32 to vector<8x32xf32>
    %85 = arith.addf %84, %83 : vector<8x32xf32>
    %86 = arith.divf %84, %85 : vector<8x32xf32>
    %87 = vector.extract_strided_slice %80 {offsets = [0, 0], sizes = [8, 32], strides = [1, 1]} : vector<8x64xf32> to vector<8x32xf32>
    %88 = math.tanh %87 : vector<8x32xf32>
    %89 = arith.mulf %86, %88 : vector<8x32xf32>
    %cst_33 = arith.constant 1.000000e+00 : f32
    %90 = vector.broadcast %cst_33 : f32 to vector<8x32xf32>
    %91 = arith.subf %90, %86 : vector<8x32xf32>
    %92 = arith.mulf %91, %72 : vector<8x32xf32>
    %93 = arith.addf %89, %92 : vector<8x32xf32>
    %cst_34 = arith.constant dense<0.000000e+00> : vector<8x128xf32>
    %94 = tpu.matmul %93, %2, %cst_34 {dimension_numbers = #tpu.dot_dimension_numbers<[1], [0], [0], [1], [0, 0, 1, 1], [], []>} : vector<8x32xf32>, vector<32x128xf32>, vector<8x128xf32> -> vector<8x128xf32>
    %95 = vector.broadcast %3 : vector<1x128xf32> to vector<8x128xf32>
    %96 = arith.addf %94, %95 : vector<8x128xf32>
    %97 = vector.extract_strided_slice %96 {offsets = [0, 32], sizes = [8, 32], strides = [1, 1]} : vector<8x128xf32> to vector<8x32xf32>
    %98 = arith.negf %97 : vector<8x32xf32>
    %99 = math.exp %98 : vector<8x32xf32>
    %cst_35 = arith.constant 1.000000e+00 : f32
    %100 = vector.broadcast %cst_35 : f32 to vector<8x32xf32>
    %101 = arith.addf %100, %99 : vector<8x32xf32>
    %102 = arith.divf %100, %101 : vector<8x32xf32>
    %103 = vector.extract_strided_slice %96 {offsets = [0, 96], sizes = [8, 32], strides = [1, 1]} : vector<8x128xf32> to vector<8x32xf32>
    %104 = arith.negf %103 : vector<8x32xf32>
    %105 = math.exp %104 : vector<8x32xf32>
    %cst_36 = arith.constant 1.000000e+00 : f32
    %106 = vector.broadcast %cst_36 : f32 to vector<8x32xf32>
    %107 = arith.addf %106, %105 : vector<8x32xf32>
    %108 = arith.divf %106, %107 : vector<8x32xf32>
    %109 = vector.extract_strided_slice %96 {offsets = [0, 0], sizes = [8, 32], strides = [1, 1]} : vector<8x128xf32> to vector<8x32xf32>
    %110 = math.tanh %109 : vector<8x32xf32>
    %111 = arith.mulf %102, %110 : vector<8x32xf32>
    %cst_37 = arith.constant 1.000000e+00 : f32
    %112 = vector.broadcast %cst_37 : f32 to vector<8x32xf32>
    %113 = arith.subf %112, %102 : vector<8x32xf32>
    %114 = arith.mulf %113, %93 : vector<8x32xf32>
    %115 = arith.addf %111, %114 : vector<8x32xf32>
    %116 = vector.extract_strided_slice %96 {offsets = [0, 64], sizes = [8, 32], strides = [1, 1]} : vector<8x128xf32> to vector<8x32xf32>
    %117 = math.tanh %116 : vector<8x32xf32>
    %118 = arith.mulf %108, %117 : vector<8x32xf32>
    %cst_38 = arith.constant 1.000000e+00 : f32
    %119 = vector.broadcast %cst_38 : f32 to vector<8x32xf32>
    %120 = arith.subf %119, %108 : vector<8x32xf32>
    %121 = arith.mulf %120, %93 : vector<8x32xf32>
    %122 = arith.addf %118, %121 : vector<8x32xf32>
    %cst_39 = arith.constant dense<0.000000e+00> : vector<8x64xf32>
    %123 = tpu.matmul %115, %4, %cst_39 {dimension_numbers = #tpu.dot_dimension_numbers<[1], [0], [0], [1], [0, 0, 1, 1], [], []>} : vector<8x32xf32>, vector<32x64xf32>, vector<8x64xf32> -> vector<8x64xf32>
    %124 = vector.broadcast %5 : vector<1x64xf32> to vector<8x64xf32>
    %125 = arith.addf %123, %124 : vector<8x64xf32>
    %126 = vector.extract_strided_slice %125 {offsets = [0, 32], sizes = [8, 32], strides = [1, 1]} : vector<8x64xf32> to vector<8x32xf32>
    %127 = arith.negf %126 : vector<8x32xf32>
    %128 = math.exp %127 : vector<8x32xf32>
    %cst_40 = arith.constant 1.000000e+00 : f32
    %129 = vector.broadcast %cst_40 : f32 to vector<8x32xf32>
    %130 = arith.addf %129, %128 : vector<8x32xf32>
    %131 = arith.divf %129, %130 : vector<8x32xf32>
    %132 = vector.extract_strided_slice %125 {offsets = [0, 0], sizes = [8, 32], strides = [1, 1]} : vector<8x64xf32> to vector<8x32xf32>
    %133 = math.tanh %132 : vector<8x32xf32>
    %134 = arith.mulf %131, %133 : vector<8x32xf32>
    %cst_41 = arith.constant 1.000000e+00 : f32
    %135 = vector.broadcast %cst_41 : f32 to vector<8x32xf32>
    %136 = arith.subf %135, %131 : vector<8x32xf32>
    %137 = arith.mulf %136, %115 : vector<8x32xf32>
    %138 = arith.addf %134, %137 : vector<8x32xf32>
    %139 = arith.addf %122, %138 : vector<8x32xf32>
    %cst_42 = arith.constant 5.000000e-01 : f32
    %140 = vector.broadcast %cst_42 : f32 to vector<8x32xf32>
    %141 = arith.mulf %139, %140 : vector<8x32xf32>
    %c1_43 = arith.constant 1 : index
    %c0_44 = arith.constant 0 : index
    %c0_45 = arith.constant 0 : index
    %142 = vector.load %arg7[%c1_43, %c0_44, %c0_45] : memref<8x8x32xf32, #tpu.memory_space<vmem>>, vector<1x8x32xf32>
    %143 = vector.shape_cast %142 : vector<1x8x32xf32> to vector<8x32xf32>
    %144 = vector.shape_cast %141 : vector<8x32xf32> to vector<1x8x32xf32>
    tpu.vector_store %arg7[%c1_43, %c0_44, %c0_45], %144 {strides = array<i32>} : memref<8x8x32xf32, #tpu.memory_space<vmem>>, vector<1x8x32xf32>,
    %c2 = arith.constant 2 : index
    %c0_46 = arith.constant 0 : index
    %c0_47 = arith.constant 0 : index
    %145 = vector.load %arg0[%c2, %c0_46, %c0_47] : memref<8x8x32xf32, #tpu.memory_space<vmem>>, vector<1x8x32xf32>
    %146 = vector.shape_cast %145 : vector<1x8x32xf32> to vector<8x32xf32>
    %cst_48 = arith.constant dense<0.000000e+00> : vector<8x64xf32>
    %147 = tpu.matmul %146, %0, %cst_48 {dimension_numbers = #tpu.dot_dimension_numbers<[1], [0], [0], [1], [0, 0, 1, 1], [], []>} : vector<8x32xf32>, vector<32x64xf32>, vector<8x64xf32> -> vector<8x64xf32>
    %148 = vector.broadcast %1 : vector<1x64xf32> to vector<8x64xf32>
    %149 = arith.addf %147, %148 : vector<8x64xf32>
    %150 = vector.extract_strided_slice %149 {offsets = [0, 32], sizes = [8, 32], strides = [1, 1]} : vector<8x64xf32> to vector<8x32xf32>
    %151 = arith.negf %150 : vector<8x32xf32>
    %152 = math.exp %151 : vector<8x32xf32>
    %cst_49 = arith.constant 1.000000e+00 : f32
    %153 = vector.broadcast %cst_49 : f32 to vector<8x32xf32>
    %154 = arith.addf %153, %152 : vector<8x32xf32>
    %155 = arith.divf %153, %154 : vector<8x32xf32>
    %156 = vector.extract_strided_slice %149 {offsets = [0, 0], sizes = [8, 32], strides = [1, 1]} : vector<8x64xf32> to vector<8x32xf32>
    %157 = math.tanh %156 : vector<8x32xf32>
    %158 = arith.mulf %155, %157 : vector<8x32xf32>
    %cst_50 = arith.constant 1.000000e+00 : f32
    %159 = vector.broadcast %cst_50 : f32 to vector<8x32xf32>
    %160 = arith.subf %159, %155 : vector<8x32xf32>
    %161 = arith.mulf %160, %141 : vector<8x32xf32>
    %162 = arith.addf %158, %161 : vector<8x32xf32>
    %cst_51 = arith.constant dense<0.000000e+00> : vector<8x128xf32>
    %163 = tpu.matmul %162, %2, %cst_51 {dimension_numbers = #tpu.dot_dimension_numbers<[1], [0], [0], [1], [0, 0, 1, 1], [], []>} : vector<8x32xf32>, vector<32x128xf32>, vector<8x128xf32> -> vector<8x128xf32>
    %164 = vector.broadcast %3 : vector<1x128xf32> to vector<8x128xf32>
    %165 = arith.addf %163, %164 : vector<8x128xf32>
    %166 = vector.extract_strided_slice %165 {offsets = [0, 32], sizes = [8, 32], strides = [1, 1]} : vector<8x128xf32> to vector<8x32xf32>
    %167 = arith.negf %166 : vector<8x32xf32>
    %168 = math.exp %167 : vector<8x32xf32>
    %cst_52 = arith.constant 1.000000e+00 : f32
    %169 = vector.broadcast %cst_52 : f32 to vector<8x32xf32>
    %170 = arith.addf %169, %168 : vector<8x32xf32>
    %171 = arith.divf %169, %170 : vector<8x32xf32>
    %172 = vector.extract_strided_slice %165 {offsets = [0, 96], sizes = [8, 32], strides = [1, 1]} : vector<8x128xf32> to vector<8x32xf32>
    %173 = arith.negf %172 : vector<8x32xf32>
    %174 = math.exp %173 : vector<8x32xf32>
    %cst_53 = arith.constant 1.000000e+00 : f32
    %175 = vector.broadcast %cst_53 : f32 to vector<8x32xf32>
    %176 = arith.addf %175, %174 : vector<8x32xf32>
    %177 = arith.divf %175, %176 : vector<8x32xf32>
    %178 = vector.extract_strided_slice %165 {offsets = [0, 0], sizes = [8, 32], strides = [1, 1]} : vector<8x128xf32> to vector<8x32xf32>
    %179 = math.tanh %178 : vector<8x32xf32>
    %180 = arith.mulf %171, %179 : vector<8x32xf32>
    %cst_54 = arith.constant 1.000000e+00 : f32
    %181 = vector.broadcast %cst_54 : f32 to vector<8x32xf32>
    %182 = arith.subf %181, %171 : vector<8x32xf32>
    %183 = arith.mulf %182, %162 : vector<8x32xf32>
    %184 = arith.addf %180, %183 : vector<8x32xf32>
    %185 = vector.extract_strided_slice %165 {offsets = [0, 64], sizes = [8, 32], strides = [1, 1]} : vector<8x128xf32> to vector<8x32xf32>
    %186 = math.tanh %185 : vector<8x32xf32>
    %187 = arith.mulf %177, %186 : vector<8x32xf32>
    %cst_55 = arith.constant 1.000000e+00 : f32
    %188 = vector.broadcast %cst_55 : f32 to vector<8x32xf32>
    %189 = arith.subf %188, %177 : vector<8x32xf32>
    %190 = arith.mulf %189, %162 : vector<8x32xf32>
    %191 = arith.addf %187, %190 : vector<8x32xf32>
    %cst_56 = arith.constant dense<0.000000e+00> : vector<8x64xf32>
    %192 = tpu.matmul %184, %4, %cst_56 {dimension_numbers = #tpu.dot_dimension_numbers<[1], [0], [0], [1], [0, 0, 1, 1], [], []>} : vector<8x32xf32>, vector<32x64xf32>, vector<8x64xf32> -> vector<8x64xf32>
    %193 = vector.broadcast %5 : vector<1x64xf32> to vector<8x64xf32>
    %194 = arith.addf %192, %193 : vector<8x64xf32>
    %195 = vector.extract_strided_slice %194 {offsets = [0, 32], sizes = [8, 32], strides = [1, 1]} : vector<8x64xf32> to vector<8x32xf32>
    %196 = arith.negf %195 : vector<8x32xf32>
    %197 = math.exp %196 : vector<8x32xf32>
    %cst_57 = arith.constant 1.000000e+00 : f32
    %198 = vector.broadcast %cst_57 : f32 to vector<8x32xf32>
    %199 = arith.addf %198, %197 : vector<8x32xf32>
    %200 = arith.divf %198, %199 : vector<8x32xf32>
    %201 = vector.extract_strided_slice %194 {offsets = [0, 0], sizes = [8, 32], strides = [1, 1]} : vector<8x64xf32> to vector<8x32xf32>
    %202 = math.tanh %201 : vector<8x32xf32>
    %203 = arith.mulf %200, %202 : vector<8x32xf32>
    %cst_58 = arith.constant 1.000000e+00 : f32
    %204 = vector.broadcast %cst_58 : f32 to vector<8x32xf32>
    %205 = arith.subf %204, %200 : vector<8x32xf32>
    %206 = arith.mulf %205, %184 : vector<8x32xf32>
    %207 = arith.addf %203, %206 : vector<8x32xf32>
    %208 = arith.addf %191, %207 : vector<8x32xf32>
    %cst_59 = arith.constant 5.000000e-01 : f32
    %209 = vector.broadcast %cst_59 : f32 to vector<8x32xf32>
    %210 = arith.mulf %208, %209 : vector<8x32xf32>
    %c2_60 = arith.constant 2 : index
    %c0_61 = arith.constant 0 : index
    %c0_62 = arith.constant 0 : index
    %211 = vector.load %arg7[%c2_60, %c0_61, %c0_62] : memref<8x8x32xf32, #tpu.memory_space<vmem>>, vector<1x8x32xf32>
    %212 = vector.shape_cast %211 : vector<1x8x32xf32> to vector<8x32xf32>
    %213 = vector.shape_cast %210 : vector<8x32xf32> to vector<1x8x32xf32>
    tpu.vector_store %arg7[%c2_60, %c0_61, %c0_62], %213 {strides = array<i32>} : memref<8x8x32xf32, #tpu.memory_space<vmem>>, vector<1x8x32xf32>,
    %c3 = arith.constant 3 : index
    %c0_63 = arith.constant 0 : index
    %c0_64 = arith.constant 0 : index
    %214 = vector.load %arg0[%c3, %c0_63, %c0_64] : memref<8x8x32xf32, #tpu.memory_space<vmem>>, vector<1x8x32xf32>
    %215 = vector.shape_cast %214 : vector<1x8x32xf32> to vector<8x32xf32>
    %cst_65 = arith.constant dense<0.000000e+00> : vector<8x64xf32>
    %216 = tpu.matmul %215, %0, %cst_65 {dimension_numbers = #tpu.dot_dimension_numbers<[1], [0], [0], [1], [0, 0, 1, 1], [], []>} : vector<8x32xf32>, vector<32x64xf32>, vector<8x64xf32> -> vector<8x64xf32>
    %217 = vector.broadcast %1 : vector<1x64xf32> to vector<8x64xf32>
    %218 = arith.addf %216, %217 : vector<8x64xf32>
    %219 = vector.extract_strided_slice %218 {offsets = [0, 32], sizes = [8, 32], strides = [1, 1]} : vector<8x64xf32> to vector<8x32xf32>
    %220 = arith.negf %219 : vector<8x32xf32>
    %221 = math.exp %220 : vector<8x32xf32>
    %cst_66 = arith.constant 1.000000e+00 : f32
    %222 = vector.broadcast %cst_66 : f32 to vector<8x32xf32>
    %223 = arith.addf %222, %221 : vector<8x32xf32>
    %224 = arith.divf %222, %223 : vector<8x32xf32>
    %225 = vector.extract_strided_slice %218 {offsets = [0, 0], sizes = [8, 32], strides = [1, 1]} : vector<8x64xf32> to vector<8x32xf32>
    %226 = math.tanh %225 : vector<8x32xf32>
    %227 = arith.mulf %224, %226 : vector<8x32xf32>
    %cst_67 = arith.constant 1.000000e+00 : f32
    %228 = vector.broadcast %cst_67 : f32 to vector<8x32xf32>
    %229 = arith.subf %228, %224 : vector<8x32xf32>
    %230 = arith.mulf %229, %210 : vector<8x32xf32>
    %231 = arith.addf %227, %230 : vector<8x32xf32>
    %cst_68 = arith.constant dense<0.000000e+00> : vector<8x128xf32>
    %232 = tpu.matmul %231, %2, %cst_68 {dimension_numbers = #tpu.dot_dimension_numbers<[1], [0], [0], [1], [0, 0, 1, 1], [], []>} : vector<8x32xf32>, vector<32x128xf32>, vector<8x128xf32> -> vector<8x128xf32>
    %233 = vector.broadcast %3 : vector<1x128xf32> to vector<8x128xf32>
    %234 = arith.addf %232, %233 : vector<8x128xf32>
    %235 = vector.extract_strided_slice %234 {offsets = [0, 32], sizes = [8, 32], strides = [1, 1]} : vector<8x128xf32> to vector<8x32xf32>
    %236 = arith.negf %235 : vector<8x32xf32>
    %237 = math.exp %236 : vector<8x32xf32>
    %cst_69 = arith.constant 1.000000e+00 : f32
    %238 = vector.broadcast %cst_69 : f32 to vector<8x32xf32>
    %239 = arith.addf %238, %237 : vector<8x32xf32>
    %240 = arith.divf %238, %239 : vector<8x32xf32>
    %241 = vector.extract_strided_slice %234 {offsets = [0, 96], sizes = [8, 32], strides = [1, 1]} : vector<8x128xf32> to vector<8x32xf32>
    %242 = arith.negf %241 : vector<8x32xf32>
    %243 = math.exp %242 : vector<8x32xf32>
    %cst_70 = arith.constant 1.000000e+00 : f32
    %244 = vector.broadcast %cst_70 : f32 to vector<8x32xf32>
    %245 = arith.addf %244, %243 : vector<8x32xf32>
    %246 = arith.divf %244, %245 : vector<8x32xf32>
    %247 = vector.extract_strided_slice %234 {offsets = [0, 0], sizes = [8, 32], strides = [1, 1]} : vector<8x128xf32> to vector<8x32xf32>
    %248 = math.tanh %247 : vector<8x32xf32>
    %249 = arith.mulf %240, %248 : vector<8x32xf32>
    %cst_71 = arith.constant 1.000000e+00 : f32
    %250 = vector.broadcast %cst_71 : f32 to vector<8x32xf32>
    %251 = arith.subf %250, %240 : vector<8x32xf32>
    %252 = arith.mulf %251, %231 : vector<8x32xf32>
    %253 = arith.addf %249, %252 : vector<8x32xf32>
    %254 = vector.extract_strided_slice %234 {offsets = [0, 64], sizes = [8, 32], strides = [1, 1]} : vector<8x128xf32> to vector<8x32xf32>
    %255 = math.tanh %254 : vector<8x32xf32>
    %256 = arith.mulf %246, %255 : vector<8x32xf32>
    %cst_72 = arith.constant 1.000000e+00 : f32
    %257 = vector.broadcast %cst_72 : f32 to vector<8x32xf32>
    %258 = arith.subf %257, %246 : vector<8x32xf32>
    %259 = arith.mulf %258, %231 : vector<8x32xf32>
    %260 = arith.addf %256, %259 : vector<8x32xf32>
    %cst_73 = arith.constant dense<0.000000e+00> : vector<8x64xf32>
    %261 = tpu.matmul %253, %4, %cst_73 {dimension_numbers = #tpu.dot_dimension_numbers<[1], [0], [0], [1], [0, 0, 1, 1], [], []>} : vector<8x32xf32>, vector<32x64xf32>, vector<8x64xf32> -> vector<8x64xf32>
    %262 = vector.broadcast %5 : vector<1x64xf32> to vector<8x64xf32>
    %263 = arith.addf %261, %262 : vector<8x64xf32>
    %264 = vector.extract_strided_slice %263 {offsets = [0, 32], sizes = [8, 32], strides = [1, 1]} : vector<8x64xf32> to vector<8x32xf32>
    %265 = arith.negf %264 : vector<8x32xf32>
    %266 = math.exp %265 : vector<8x32xf32>
    %cst_74 = arith.constant 1.000000e+00 : f32
    %267 = vector.broadcast %cst_74 : f32 to vector<8x32xf32>
    %268 = arith.addf %267, %266 : vector<8x32xf32>
    %269 = arith.divf %267, %268 : vector<8x32xf32>
    %270 = vector.extract_strided_slice %263 {offsets = [0, 0], sizes = [8, 32], strides = [1, 1]} : vector<8x64xf32> to vector<8x32xf32>
    %271 = math.tanh %270 : vector<8x32xf32>
    %272 = arith.mulf %269, %271 : vector<8x32xf32>
    %cst_75 = arith.constant 1.000000e+00 : f32
    %273 = vector.broadcast %cst_75 : f32 to vector<8x32xf32>
    %274 = arith.subf %273, %269 : vector<8x32xf32>
    %275 = arith.mulf %274, %253 : vector<8x32xf32>
    %276 = arith.addf %272, %275 : vector<8x32xf32>
    %277 = arith.addf %260, %276 : vector<8x32xf32>
    %cst_76 = arith.constant 5.000000e-01 : f32
    %278 = vector.broadcast %cst_76 : f32 to vector<8x32xf32>
    %279 = arith.mulf %277, %278 : vector<8x32xf32>
    %c3_77 = arith.constant 3 : index
    %c0_78 = arith.constant 0 : index
    %c0_79 = arith.constant 0 : index
    %280 = vector.load %arg7[%c3_77, %c0_78, %c0_79] : memref<8x8x32xf32, #tpu.memory_space<vmem>>, vector<1x8x32xf32>
    %281 = vector.shape_cast %280 : vector<1x8x32xf32> to vector<8x32xf32>
    %282 = vector.shape_cast %279 : vector<8x32xf32> to vector<1x8x32xf32>
    tpu.vector_store %arg7[%c3_77, %c0_78, %c0_79], %282 {strides = array<i32>} : memref<8x8x32xf32, #tpu.memory_space<vmem>>, vector<1x8x32xf32>,
    %c4 = arith.constant 4 : index
    %c0_80 = arith.constant 0 : index
    %c0_81 = arith.constant 0 : index
    %283 = vector.load %arg0[%c4, %c0_80, %c0_81] : memref<8x8x32xf32, #tpu.memory_space<vmem>>, vector<1x8x32xf32>
    %284 = vector.shape_cast %283 : vector<1x8x32xf32> to vector<8x32xf32>
    %cst_82 = arith.constant dense<0.000000e+00> : vector<8x64xf32>
    %285 = tpu.matmul %284, %0, %cst_82 {dimension_numbers = #tpu.dot_dimension_numbers<[1], [0], [0], [1], [0, 0, 1, 1], [], []>} : vector<8x32xf32>, vector<32x64xf32>, vector<8x64xf32> -> vector<8x64xf32>
    %286 = vector.broadcast %1 : vector<1x64xf32> to vector<8x64xf32>
    %287 = arith.addf %285, %286 : vector<8x64xf32>
    %288 = vector.extract_strided_slice %287 {offsets = [0, 32], sizes = [8, 32], strides = [1, 1]} : vector<8x64xf32> to vector<8x32xf32>
    %289 = arith.negf %288 : vector<8x32xf32>
    %290 = math.exp %289 : vector<8x32xf32>
    %cst_83 = arith.constant 1.000000e+00 : f32
    %291 = vector.broadcast %cst_83 : f32 to vector<8x32xf32>
    %292 = arith.addf %291, %290 : vector<8x32xf32>
    %293 = arith.divf %291, %292 : vector<8x32xf32>
    %294 = vector.extract_strided_slice %287 {offsets = [0, 0], sizes = [8, 32], strides = [1, 1]} : vector<8x64xf32> to vector<8x32xf32>
    %295 = math.tanh %294 : vector<8x32xf32>
    %296 = arith.mulf %293, %295 : vector<8x32xf32>
    %cst_84 = arith.constant 1.000000e+00 : f32
    %297 = vector.broadcast %cst_84 : f32 to vector<8x32xf32>
    %298 = arith.subf %297, %293 : vector<8x32xf32>
    %299 = arith.mulf %298, %279 : vector<8x32xf32>
    %300 = arith.addf %296, %299 : vector<8x32xf32>
    %cst_85 = arith.constant dense<0.000000e+00> : vector<8x128xf32>
    %301 = tpu.matmul %300, %2, %cst_85 {dimension_numbers = #tpu.dot_dimension_numbers<[1], [0], [0], [1], [0, 0, 1, 1], [], []>} : vector<8x32xf32>, vector<32x128xf32>, vector<8x128xf32> -> vector<8x128xf32>
    %302 = vector.broadcast %3 : vector<1x128xf32> to vector<8x128xf32>
    %303 = arith.addf %301, %302 : vector<8x128xf32>
    %304 = vector.extract_strided_slice %303 {offsets = [0, 32], sizes = [8, 32], strides = [1, 1]} : vector<8x128xf32> to vector<8x32xf32>
    %305 = arith.negf %304 : vector<8x32xf32>
    %306 = math.exp %305 : vector<8x32xf32>
    %cst_86 = arith.constant 1.000000e+00 : f32
    %307 = vector.broadcast %cst_86 : f32 to vector<8x32xf32>
    %308 = arith.addf %307, %306 : vector<8x32xf32>
    %309 = arith.divf %307, %308 : vector<8x32xf32>
    %310 = vector.extract_strided_slice %303 {offsets = [0, 96], sizes = [8, 32], strides = [1, 1]} : vector<8x128xf32> to vector<8x32xf32>
    %311 = arith.negf %310 : vector<8x32xf32>
    %312 = math.exp %311 : vector<8x32xf32>
    %cst_87 = arith.constant 1.000000e+00 : f32
    %313 = vector.broadcast %cst_87 : f32 to vector<8x32xf32>
    %314 = arith.addf %313, %312 : vector<8x32xf32>
    %315 = arith.divf %313, %314 : vector<8x32xf32>
    %316 = vector.extract_strided_slice %303 {offsets = [0, 0], sizes = [8, 32], strides = [1, 1]} : vector<8x128xf32> to vector<8x32xf32>
    %317 = math.tanh %316 : vector<8x32xf32>
    %318 = arith.mulf %309, %317 : vector<8x32xf32>
    %cst_88 = arith.constant 1.000000e+00 : f32
    %319 = vector.broadcast %cst_88 : f32 to vector<8x32xf32>
    %320 = arith.subf %319, %309 : vector<8x32xf32>
    %321 = arith.mulf %320, %300 : vector<8x32xf32>
    %322 = arith.addf %318, %321 : vector<8x32xf32>
    %323 = vector.extract_strided_slice %303 {offsets = [0, 64], sizes = [8, 32], strides = [1, 1]} : vector<8x128xf32> to vector<8x32xf32>
    %324 = math.tanh %323 : vector<8x32xf32>
    %325 = arith.mulf %315, %324 : vector<8x32xf32>
    %cst_89 = arith.constant 1.000000e+00 : f32
    %326 = vector.broadcast %cst_89 : f32 to vector<8x32xf32>
    %327 = arith.subf %326, %315 : vector<8x32xf32>
    %328 = arith.mulf %327, %300 : vector<8x32xf32>
    %329 = arith.addf %325, %328 : vector<8x32xf32>
    %cst_90 = arith.constant dense<0.000000e+00> : vector<8x64xf32>
    %330 = tpu.matmul %322, %4, %cst_90 {dimension_numbers = #tpu.dot_dimension_numbers<[1], [0], [0], [1], [0, 0, 1, 1], [], []>} : vector<8x32xf32>, vector<32x64xf32>, vector<8x64xf32> -> vector<8x64xf32>
    %331 = vector.broadcast %5 : vector<1x64xf32> to vector<8x64xf32>
    %332 = arith.addf %330, %331 : vector<8x64xf32>
    %333 = vector.extract_strided_slice %332 {offsets = [0, 32], sizes = [8, 32], strides = [1, 1]} : vector<8x64xf32> to vector<8x32xf32>
    %334 = arith.negf %333 : vector<8x32xf32>
    %335 = math.exp %334 : vector<8x32xf32>
    %cst_91 = arith.constant 1.000000e+00 : f32
    %336 = vector.broadcast %cst_91 : f32 to vector<8x32xf32>
    %337 = arith.addf %336, %335 : vector<8x32xf32>
    %338 = arith.divf %336, %337 : vector<8x32xf32>
    %339 = vector.extract_strided_slice %332 {offsets = [0, 0], sizes = [8, 32], strides = [1, 1]} : vector<8x64xf32> to vector<8x32xf32>
    %340 = math.tanh %339 : vector<8x32xf32>
    %341 = arith.mulf %338, %340 : vector<8x32xf32>
    %cst_92 = arith.constant 1.000000e+00 : f32
    %342 = vector.broadcast %cst_92 : f32 to vector<8x32xf32>
    %343 = arith.subf %342, %338 : vector<8x32xf32>
    %344 = arith.mulf %343, %322 : vector<8x32xf32>
    %345 = arith.addf %341, %344 : vector<8x32xf32>
    %346 = arith.addf %329, %345 : vector<8x32xf32>
    %cst_93 = arith.constant 5.000000e-01 : f32
    %347 = vector.broadcast %cst_93 : f32 to vector<8x32xf32>
    %348 = arith.mulf %346, %347 : vector<8x32xf32>
    %c4_94 = arith.constant 4 : index
    %c0_95 = arith.constant 0 : index
    %c0_96 = arith.constant 0 : index
    %349 = vector.load %arg7[%c4_94, %c0_95, %c0_96] : memref<8x8x32xf32, #tpu.memory_space<vmem>>, vector<1x8x32xf32>
    %350 = vector.shape_cast %349 : vector<1x8x32xf32> to vector<8x32xf32>
    %351 = vector.shape_cast %348 : vector<8x32xf32> to vector<1x8x32xf32>
    tpu.vector_store %arg7[%c4_94, %c0_95, %c0_96], %351 {strides = array<i32>} : memref<8x8x32xf32, #tpu.memory_space<vmem>>, vector<1x8x32xf32>,
    %c5 = arith.constant 5 : index
    %c0_97 = arith.constant 0 : index
    %c0_98 = arith.constant 0 : index
    %352 = vector.load %arg0[%c5, %c0_97, %c0_98] : memref<8x8x32xf32, #tpu.memory_space<vmem>>, vector<1x8x32xf32>
    %353 = vector.shape_cast %352 : vector<1x8x32xf32> to vector<8x32xf32>
    %cst_99 = arith.constant dense<0.000000e+00> : vector<8x64xf32>
    %354 = tpu.matmul %353, %0, %cst_99 {dimension_numbers = #tpu.dot_dimension_numbers<[1], [0], [0], [1], [0, 0, 1, 1], [], []>} : vector<8x32xf32>, vector<32x64xf32>, vector<8x64xf32> -> vector<8x64xf32>
    %355 = vector.broadcast %1 : vector<1x64xf32> to vector<8x64xf32>
    %356 = arith.addf %354, %355 : vector<8x64xf32>
    %357 = vector.extract_strided_slice %356 {offsets = [0, 32], sizes = [8, 32], strides = [1, 1]} : vector<8x64xf32> to vector<8x32xf32>
    %358 = arith.negf %357 : vector<8x32xf32>
    %359 = math.exp %358 : vector<8x32xf32>
    %cst_100 = arith.constant 1.000000e+00 : f32
    %360 = vector.broadcast %cst_100 : f32 to vector<8x32xf32>
    %361 = arith.addf %360, %359 : vector<8x32xf32>
    %362 = arith.divf %360, %361 : vector<8x32xf32>
    %363 = vector.extract_strided_slice %356 {offsets = [0, 0], sizes = [8, 32], strides = [1, 1]} : vector<8x64xf32> to vector<8x32xf32>
    %364 = math.tanh %363 : vector<8x32xf32>
    %365 = arith.mulf %362, %364 : vector<8x32xf32>
    %cst_101 = arith.constant 1.000000e+00 : f32
    %366 = vector.broadcast %cst_101 : f32 to vector<8x32xf32>
    %367 = arith.subf %366, %362 : vector<8x32xf32>
    %368 = arith.mulf %367, %348 : vector<8x32xf32>
    %369 = arith.addf %365, %368 : vector<8x32xf32>
    %cst_102 = arith.constant dense<0.000000e+00> : vector<8x128xf32>
    %370 = tpu.matmul %369, %2, %cst_102 {dimension_numbers = #tpu.dot_dimension_numbers<[1], [0], [0], [1], [0, 0, 1, 1], [], []>} : vector<8x32xf32>, vector<32x128xf32>, vector<8x128xf32> -> vector<8x128xf32>
    %371 = vector.broadcast %3 : vector<1x128xf32> to vector<8x128xf32>
    %372 = arith.addf %370, %371 : vector<8x128xf32>
    %373 = vector.extract_strided_slice %372 {offsets = [0, 32], sizes = [8, 32], strides = [1, 1]} : vector<8x128xf32> to vector<8x32xf32>
    %374 = arith.negf %373 : vector<8x32xf32>
    %375 = math.exp %374 : vector<8x32xf32>
    %cst_103 = arith.constant 1.000000e+00 : f32
    %376 = vector.broadcast %cst_103 : f32 to vector<8x32xf32>
    %377 = arith.addf %376, %375 : vector<8x32xf32>
    %378 = arith.divf %376, %377 : vector<8x32xf32>
    %379 = vector.extract_strided_slice %372 {offsets = [0, 96], sizes = [8, 32], strides = [1, 1]} : vector<8x128xf32> to vector<8x32xf32>
    %380 = arith.negf %379 : vector<8x32xf32>
    %381 = math.exp %380 : vector<8x32xf32>
    %cst_104 = arith.constant 1.000000e+00 : f32
    %382 = vector.broadcast %cst_104 : f32 to vector<8x32xf32>
    %383 = arith.addf %382, %381 : vector<8x32xf32>
    %384 = arith.divf %382, %383 : vector<8x32xf32>
    %385 = vector.extract_strided_slice %372 {offsets = [0, 0], sizes = [8, 32], strides = [1, 1]} : vector<8x128xf32> to vector<8x32xf32>
    %386 = math.tanh %385 : vector<8x32xf32>
    %387 = arith.mulf %378, %386 : vector<8x32xf32>
    %cst_105 = arith.constant 1.000000e+00 : f32
    %388 = vector.broadcast %cst_105 : f32 to vector<8x32xf32>
    %389 = arith.subf %388, %378 : vector<8x32xf32>
    %390 = arith.mulf %389, %369 : vector<8x32xf32>
    %391 = arith.addf %387, %390 : vector<8x32xf32>
    %392 = vector.extract_strided_slice %372 {offsets = [0, 64], sizes = [8, 32], strides = [1, 1]} : vector<8x128xf32> to vector<8x32xf32>
    %393 = math.tanh %392 : vector<8x32xf32>
    %394 = arith.mulf %384, %393 : vector<8x32xf32>
    %cst_106 = arith.constant 1.000000e+00 : f32
    %395 = vector.broadcast %cst_106 : f32 to vector<8x32xf32>
    %396 = arith.subf %395, %384 : vector<8x32xf32>
    %397 = arith.mulf %396, %369 : vector<8x32xf32>
    %398 = arith.addf %394, %397 : vector<8x32xf32>
    %cst_107 = arith.constant dense<0.000000e+00> : vector<8x64xf32>
    %399 = tpu.matmul %391, %4, %cst_107 {dimension_numbers = #tpu.dot_dimension_numbers<[1], [0], [0], [1], [0, 0, 1, 1], [], []>} : vector<8x32xf32>, vector<32x64xf32>, vector<8x64xf32> -> vector<8x64xf32>
    %400 = vector.broadcast %5 : vector<1x64xf32> to vector<8x64xf32>
    %401 = arith.addf %399, %400 : vector<8x64xf32>
    %402 = vector.extract_strided_slice %401 {offsets = [0, 32], sizes = [8, 32], strides = [1, 1]} : vector<8x64xf32> to vector<8x32xf32>
    %403 = arith.negf %402 : vector<8x32xf32>
    %404 = math.exp %403 : vector<8x32xf32>
    %cst_108 = arith.constant 1.000000e+00 : f32
    %405 = vector.broadcast %cst_108 : f32 to vector<8x32xf32>
    %406 = arith.addf %405, %404 : vector<8x32xf32>
    %407 = arith.divf %405, %406 : vector<8x32xf32>
    %408 = vector.extract_strided_slice %401 {offsets = [0, 0], sizes = [8, 32], strides = [1, 1]} : vector<8x64xf32> to vector<8x32xf32>
    %409 = math.tanh %408 : vector<8x32xf32>
    %410 = arith.mulf %407, %409 : vector<8x32xf32>
    %cst_109 = arith.constant 1.000000e+00 : f32
    %411 = vector.broadcast %cst_109 : f32 to vector<8x32xf32>
    %412 = arith.subf %411, %407 : vector<8x32xf32>
    %413 = arith.mulf %412, %391 : vector<8x32xf32>
    %414 = arith.addf %410, %413 : vector<8x32xf32>
    %415 = arith.addf %398, %414 : vector<8x32xf32>
    %cst_110 = arith.constant 5.000000e-01 : f32
    %416 = vector.broadcast %cst_110 : f32 to vector<8x32xf32>
    %417 = arith.mulf %415, %416 : vector<8x32xf32>
    %c5_111 = arith.constant 5 : index
    %c0_112 = arith.constant 0 : index
    %c0_113 = arith.constant 0 : index
    %418 = vector.load %arg7[%c5_111, %c0_112, %c0_113] : memref<8x8x32xf32, #tpu.memory_space<vmem>>, vector<1x8x32xf32>
    %419 = vector.shape_cast %418 : vector<1x8x32xf32> to vector<8x32xf32>
    %420 = vector.shape_cast %417 : vector<8x32xf32> to vector<1x8x32xf32>
    tpu.vector_store %arg7[%c5_111, %c0_112, %c0_113], %420 {strides = array<i32>} : memref<8x8x32xf32, #tpu.memory_space<vmem>>, vector<1x8x32xf32>,
    %c6 = arith.constant 6 : index
    %c0_114 = arith.constant 0 : index
    %c0_115 = arith.constant 0 : index
    %421 = vector.load %arg0[%c6, %c0_114, %c0_115] : memref<8x8x32xf32, #tpu.memory_space<vmem>>, vector<1x8x32xf32>
    %422 = vector.shape_cast %421 : vector<1x8x32xf32> to vector<8x32xf32>
    %cst_116 = arith.constant dense<0.000000e+00> : vector<8x64xf32>
    %423 = tpu.matmul %422, %0, %cst_116 {dimension_numbers = #tpu.dot_dimension_numbers<[1], [0], [0], [1], [0, 0, 1, 1], [], []>} : vector<8x32xf32>, vector<32x64xf32>, vector<8x64xf32> -> vector<8x64xf32>
    %424 = vector.broadcast %1 : vector<1x64xf32> to vector<8x64xf32>
    %425 = arith.addf %423, %424 : vector<8x64xf32>
    %426 = vector.extract_strided_slice %425 {offsets = [0, 32], sizes = [8, 32], strides = [1, 1]} : vector<8x64xf32> to vector<8x32xf32>
    %427 = arith.negf %426 : vector<8x32xf32>
    %428 = math.exp %427 : vector<8x32xf32>
    %cst_117 = arith.constant 1.000000e+00 : f32
    %429 = vector.broadcast %cst_117 : f32 to vector<8x32xf32>
    %430 = arith.addf %429, %428 : vector<8x32xf32>
    %431 = arith.divf %429, %430 : vector<8x32xf32>
    %432 = vector.extract_strided_slice %425 {offsets = [0, 0], sizes = [8, 32], strides = [1, 1]} : vector<8x64xf32> to vector<8x32xf32>
    %433 = math.tanh %432 : vector<8x32xf32>
    %434 = arith.mulf %431, %433 : vector<8x32xf32>
    %cst_118 = arith.constant 1.000000e+00 : f32
    %435 = vector.broadcast %cst_118 : f32 to vector<8x32xf32>
    %436 = arith.subf %435, %431 : vector<8x32xf32>
    %437 = arith.mulf %436, %417 : vector<8x32xf32>
    %438 = arith.addf %434, %437 : vector<8x32xf32>
    %cst_119 = arith.constant dense<0.000000e+00> : vector<8x128xf32>
    %439 = tpu.matmul %438, %2, %cst_119 {dimension_numbers = #tpu.dot_dimension_numbers<[1], [0], [0], [1], [0, 0, 1, 1], [], []>} : vector<8x32xf32>, vector<32x128xf32>, vector<8x128xf32> -> vector<8x128xf32>
    %440 = vector.broadcast %3 : vector<1x128xf32> to vector<8x128xf32>
    %441 = arith.addf %439, %440 : vector<8x128xf32>
    %442 = vector.extract_strided_slice %441 {offsets = [0, 32], sizes = [8, 32], strides = [1, 1]} : vector<8x128xf32> to vector<8x32xf32>
    %443 = arith.negf %442 : vector<8x32xf32>
    %444 = math.exp %443 : vector<8x32xf32>
    %cst_120 = arith.constant 1.000000e+00 : f32
    %445 = vector.broadcast %cst_120 : f32 to vector<8x32xf32>
    %446 = arith.addf %445, %444 : vector<8x32xf32>
    %447 = arith.divf %445, %446 : vector<8x32xf32>
    %448 = vector.extract_strided_slice %441 {offsets = [0, 96], sizes = [8, 32], strides = [1, 1]} : vector<8x128xf32> to vector<8x32xf32>
    %449 = arith.negf %448 : vector<8x32xf32>
    %450 = math.exp %449 : vector<8x32xf32>
    %cst_121 = arith.constant 1.000000e+00 : f32
    %451 = vector.broadcast %cst_121 : f32 to vector<8x32xf32>
    %452 = arith.addf %451, %450 : vector<8x32xf32>
    %453 = arith.divf %451, %452 : vector<8x32xf32>
    %454 = vector.extract_strided_slice %441 {offsets = [0, 0], sizes = [8, 32], strides = [1, 1]} : vector<8x128xf32> to vector<8x32xf32>
    %455 = math.tanh %454 : vector<8x32xf32>
    %456 = arith.mulf %447, %455 : vector<8x32xf32>
    %cst_122 = arith.constant 1.000000e+00 : f32
    %457 = vector.broadcast %cst_122 : f32 to vector<8x32xf32>
    %458 = arith.subf %457, %447 : vector<8x32xf32>
    %459 = arith.mulf %458, %438 : vector<8x32xf32>
    %460 = arith.addf %456, %459 : vector<8x32xf32>
    %461 = vector.extract_strided_slice %441 {offsets = [0, 64], sizes = [8, 32], strides = [1, 1]} : vector<8x128xf32> to vector<8x32xf32>
    %462 = math.tanh %461 : vector<8x32xf32>
    %463 = arith.mulf %453, %462 : vector<8x32xf32>
    %cst_123 = arith.constant 1.000000e+00 : f32
    %464 = vector.broadcast %cst_123 : f32 to vector<8x32xf32>
    %465 = arith.subf %464, %453 : vector<8x32xf32>
    %466 = arith.mulf %465, %438 : vector<8x32xf32>
    %467 = arith.addf %463, %466 : vector<8x32xf32>
    %cst_124 = arith.constant dense<0.000000e+00> : vector<8x64xf32>
    %468 = tpu.matmul %460, %4, %cst_124 {dimension_numbers = #tpu.dot_dimension_numbers<[1], [0], [0], [1], [0, 0, 1, 1], [], []>} : vector<8x32xf32>, vector<32x64xf32>, vector<8x64xf32> -> vector<8x64xf32>
    %469 = vector.broadcast %5 : vector<1x64xf32> to vector<8x64xf32>
    %470 = arith.addf %468, %469 : vector<8x64xf32>
    %471 = vector.extract_strided_slice %470 {offsets = [0, 32], sizes = [8, 32], strides = [1, 1]} : vector<8x64xf32> to vector<8x32xf32>
    %472 = arith.negf %471 : vector<8x32xf32>
    %473 = math.exp %472 : vector<8x32xf32>
    %cst_125 = arith.constant 1.000000e+00 : f32
    %474 = vector.broadcast %cst_125 : f32 to vector<8x32xf32>
    %475 = arith.addf %474, %473 : vector<8x32xf32>
    %476 = arith.divf %474, %475 : vector<8x32xf32>
    %477 = vector.extract_strided_slice %470 {offsets = [0, 0], sizes = [8, 32], strides = [1, 1]} : vector<8x64xf32> to vector<8x32xf32>
    %478 = math.tanh %477 : vector<8x32xf32>
    %479 = arith.mulf %476, %478 : vector<8x32xf32>
    %cst_126 = arith.constant 1.000000e+00 : f32
    %480 = vector.broadcast %cst_126 : f32 to vector<8x32xf32>
    %481 = arith.subf %480, %476 : vector<8x32xf32>
    %482 = arith.mulf %481, %460 : vector<8x32xf32>
    %483 = arith.addf %479, %482 : vector<8x32xf32>
    %484 = arith.addf %467, %483 : vector<8x32xf32>
    %cst_127 = arith.constant 5.000000e-01 : f32
    %485 = vector.broadcast %cst_127 : f32 to vector<8x32xf32>
    %486 = arith.mulf %484, %485 : vector<8x32xf32>
    %c6_128 = arith.constant 6 : index
    %c0_129 = arith.constant 0 : index
    %c0_130 = arith.constant 0 : index
    %487 = vector.load %arg7[%c6_128, %c0_129, %c0_130] : memref<8x8x32xf32, #tpu.memory_space<vmem>>, vector<1x8x32xf32>
    %488 = vector.shape_cast %487 : vector<1x8x32xf32> to vector<8x32xf32>
    %489 = vector.shape_cast %486 : vector<8x32xf32> to vector<1x8x32xf32>
    tpu.vector_store %arg7[%c6_128, %c0_129, %c0_130], %489 {strides = array<i32>} : memref<8x8x32xf32, #tpu.memory_space<vmem>>, vector<1x8x32xf32>,
    %c7 = arith.constant 7 : index
    %c0_131 = arith.constant 0 : index
    %c0_132 = arith.constant 0 : index
    %490 = vector.load %arg0[%c7, %c0_131, %c0_132] : memref<8x8x32xf32, #tpu.memory_space<vmem>>, vector<1x8x32xf32>
    %491 = vector.shape_cast %490 : vector<1x8x32xf32> to vector<8x32xf32>
    %cst_133 = arith.constant dense<0.000000e+00> : vector<8x64xf32>
    %492 = tpu.matmul %491, %0, %cst_133 {dimension_numbers = #tpu.dot_dimension_numbers<[1], [0], [0], [1], [0, 0, 1, 1], [], []>} : vector<8x32xf32>, vector<32x64xf32>, vector<8x64xf32> -> vector<8x64xf32>
    %493 = vector.broadcast %1 : vector<1x64xf32> to vector<8x64xf32>
    %494 = arith.addf %492, %493 : vector<8x64xf32>
    %495 = vector.extract_strided_slice %494 {offsets = [0, 32], sizes = [8, 32], strides = [1, 1]} : vector<8x64xf32> to vector<8x32xf32>
    %496 = arith.negf %495 : vector<8x32xf32>
    %497 = math.exp %496 : vector<8x32xf32>
    %cst_134 = arith.constant 1.000000e+00 : f32
    %498 = vector.broadcast %cst_134 : f32 to vector<8x32xf32>
    %499 = arith.addf %498, %497 : vector<8x32xf32>
    %500 = arith.divf %498, %499 : vector<8x32xf32>
    %501 = vector.extract_strided_slice %494 {offsets = [0, 0], sizes = [8, 32], strides = [1, 1]} : vector<8x64xf32> to vector<8x32xf32>
    %502 = math.tanh %501 : vector<8x32xf32>
    %503 = arith.mulf %500, %502 : vector<8x32xf32>
    %cst_135 = arith.constant 1.000000e+00 : f32
    %504 = vector.broadcast %cst_135 : f32 to vector<8x32xf32>
    %505 = arith.subf %504, %500 : vector<8x32xf32>
    %506 = arith.mulf %505, %486 : vector<8x32xf32>
    %507 = arith.addf %503, %506 : vector<8x32xf32>
    %cst_136 = arith.constant dense<0.000000e+00> : vector<8x128xf32>
    %508 = tpu.matmul %507, %2, %cst_136 {dimension_numbers = #tpu.dot_dimension_numbers<[1], [0], [0], [1], [0, 0, 1, 1], [], []>} : vector<8x32xf32>, vector<32x128xf32>, vector<8x128xf32> -> vector<8x128xf32>
    %509 = vector.broadcast %3 : vector<1x128xf32> to vector<8x128xf32>
    %510 = arith.addf %508, %509 : vector<8x128xf32>
    %511 = vector.extract_strided_slice %510 {offsets = [0, 32], sizes = [8, 32], strides = [1, 1]} : vector<8x128xf32> to vector<8x32xf32>
    %512 = arith.negf %511 : vector<8x32xf32>
    %513 = math.exp %512 : vector<8x32xf32>
    %cst_137 = arith.constant 1.000000e+00 : f32
    %514 = vector.broadcast %cst_137 : f32 to vector<8x32xf32>
    %515 = arith.addf %514, %513 : vector<8x32xf32>
    %516 = arith.divf %514, %515 : vector<8x32xf32>
    %517 = vector.extract_strided_slice %510 {offsets = [0, 96], sizes = [8, 32], strides = [1, 1]} : vector<8x128xf32> to vector<8x32xf32>
    %518 = arith.negf %517 : vector<8x32xf32>
    %519 = math.exp %518 : vector<8x32xf32>
    %cst_138 = arith.constant 1.000000e+00 : f32
    %520 = vector.broadcast %cst_138 : f32 to vector<8x32xf32>
    %521 = arith.addf %520, %519 : vector<8x32xf32>
    %522 = arith.divf %520, %521 : vector<8x32xf32>
    %523 = vector.extract_strided_slice %510 {offsets = [0, 0], sizes = [8, 32], strides = [1, 1]} : vector<8x128xf32> to vector<8x32xf32>
    %524 = math.tanh %523 : vector<8x32xf32>
    %525 = arith.mulf %516, %524 : vector<8x32xf32>
    %cst_139 = arith.constant 1.000000e+00 : f32
    %526 = vector.broadcast %cst_139 : f32 to vector<8x32xf32>
    %527 = arith.subf %526, %516 : vector<8x32xf32>
    %528 = arith.mulf %527, %507 : vector<8x32xf32>
    %529 = arith.addf %525, %528 : vector<8x32xf32>
    %530 = vector.extract_strided_slice %510 {offsets = [0, 64], sizes = [8, 32], strides = [1, 1]} : vector<8x128xf32> to vector<8x32xf32>
    %531 = math.tanh %530 : vector<8x32xf32>
    %532 = arith.mulf %522, %531 : vector<8x32xf32>
    %cst_140 = arith.constant 1.000000e+00 : f32
    %533 = vector.broadcast %cst_140 : f32 to vector<8x32xf32>
    %534 = arith.subf %533, %522 : vector<8x32xf32>
    %535 = arith.mulf %534, %507 : vector<8x32xf32>
    %536 = arith.addf %532, %535 : vector<8x32xf32>
    %cst_141 = arith.constant dense<0.000000e+00> : vector<8x64xf32>
    %537 = tpu.matmul %529, %4, %cst_141 {dimension_numbers = #tpu.dot_dimension_numbers<[1], [0], [0], [1], [0, 0, 1, 1], [], []>} : vector<8x32xf32>, vector<32x64xf32>, vector<8x64xf32> -> vector<8x64xf32>
    %538 = vector.broadcast %5 : vector<1x64xf32> to vector<8x64xf32>
    %539 = arith.addf %537, %538 : vector<8x64xf32>
    %540 = vector.extract_strided_slice %539 {offsets = [0, 32], sizes = [8, 32], strides = [1, 1]} : vector<8x64xf32> to vector<8x32xf32>
    %541 = arith.negf %540 : vector<8x32xf32>
    %542 = math.exp %541 : vector<8x32xf32>
    %cst_142 = arith.constant 1.000000e+00 : f32
    %543 = vector.broadcast %cst_142 : f32 to vector<8x32xf32>
    %544 = arith.addf %543, %542 : vector<8x32xf32>
    %545 = arith.divf %543, %544 : vector<8x32xf32>
    %546 = vector.extract_strided_slice %539 {offsets = [0, 0], sizes = [8, 32], strides = [1, 1]} : vector<8x64xf32> to vector<8x32xf32>
    %547 = math.tanh %546 : vector<8x32xf32>
    %548 = arith.mulf %545, %547 : vector<8x32xf32>
    %cst_143 = arith.constant 1.000000e+00 : f32
    %549 = vector.broadcast %cst_143 : f32 to vector<8x32xf32>
    %550 = arith.subf %549, %545 : vector<8x32xf32>
    %551 = arith.mulf %550, %529 : vector<8x32xf32>
    %552 = arith.addf %548, %551 : vector<8x32xf32>
    %553 = arith.addf %536, %552 : vector<8x32xf32>
    %cst_144 = arith.constant 5.000000e-01 : f32
    %554 = vector.broadcast %cst_144 : f32 to vector<8x32xf32>
    %555 = arith.mulf %553, %554 : vector<8x32xf32>
    %c7_145 = arith.constant 7 : index
    %c0_146 = arith.constant 0 : index
    %c0_147 = arith.constant 0 : index
    %556 = vector.load %arg7[%c7_145, %c0_146, %c0_147] : memref<8x8x32xf32, #tpu.memory_space<vmem>>, vector<1x8x32xf32>
    %557 = vector.shape_cast %556 : vector<1x8x32xf32> to vector<8x32xf32>
    %558 = vector.shape_cast %555 : vector<8x32xf32> to vector<1x8x32xf32>
    tpu.vector_store %arg7[%c7_145, %c0_146, %c0_147], %558 {strides = array<i32>} : memref<8x8x32xf32, #tpu.memory_space<vmem>>, vector<1x8x32xf32>,
    return
  }
}

</mosaic_0001>

<bundles_post_ra>
// kernel: tpu_custom_call.1
= control target key start
LH: loop header
LB: loop body
LE: loop exit
PB: predicated region body
PF: predicated region fallthrough
CT: control target
= control target key end

     0   :  { %12 = vsyncpa [#allocation3], 0  ;;  %s3780_s0 = inlined_call_operand.hbm [shape: f32[8,8,32], index: 0, kind: input, shape index: {}]   ;;  %s3781_s1 = inlined_call_operand.hbm [shape: f32[32,64], index: 1, kind: input, shape index: {}]   ;;  %s3782_s2 = inlined_call_operand.vmem [shape: f32[1,64], index: 2, kind: input, shape index: {}]   ;;  %s3783_s3 = inlined_call_operand.hbm [shape: f32[32,128], index: 3, kind: input, shape index: {}]   ;;  %s3784_s4 = inlined_call_operand.vmem [shape: f32[1,128], index: 4, kind: input, shape index: {}]   ;;  %s3785_s5 = inlined_call_operand.hbm [shape: f32[32,64], index: 5, kind: input, shape index: {}]   ;;  %s3786_s6 = inlined_call_operand.vmem [shape: f32[1,64], index: 6, kind: input, shape index: {}]   ;;  %s3787_s7 = inlined_call_operand.hbm [shape: f32[8,8,32], index: 7, kind: output, shape index: {}]  }
   0x1   :  { %13 = vsyncpa [#allocation6], 0 }
   0x2   :  { %14 = vsyncpa [#allocation9], 0 }
   0x3   :  { %15 = vsyncpa [#allocation4], 0  ;;  %s3307_s24 = smov [#allocation5]   ;;  %s3308_s26 = smov [#allocation2]  }
   0x4   :  { %s33_s25 = sshll.u32 %s3307_s24, 4  ;;  %s21_s27 = sshll.u32 %s3308_s26, 4  ;;  %s34_s25 = int_to_ptr.vmem [resolvable:$true] %s33_s25  ;;  %s3360_s27 = int_to_ptr.vmem [resolvable:$true] %s21_s27 }
   0x5   :  { %s3189_s30 = scalar_lea.hbm %s3781_s1, 512 }
   0x6   :  { %p3190_p0 = scmp.ne.s32.totalorder %s3781_s1, %s3189_s30  ;;  %p3193_p1 = scmp.lt.u32.totalorder %s3189_s30, %s3781_s1 }
   0x8   :  { %p3195_p2 = pnand %p3193_p1, %p3190_p0 }
   0xa   :  { %3198 = shalt.err (!%p3195_p2)
}
   0xb   :  { %s3199_s12 = scalar_lea.vmem %s34_s25, 512  ;;  %p3204_p4 = scmp.lt.s32.totalorder %s34_s25, %s34_s25 }
   0xc   :  { %p3200_p3 = scmp.ne.s32.totalorder %s34_s25, %s3199_s12  ;;  %p3205_p5 = scmp.lt.s32.totalorder %s3199_s12, %s3199_s12 }
   0xe   :  { %p3206_p6 = por %p3205_p5, %p3204_p4 }
  0x10   :  { %p3207_p7 = pnand %p3206_p6, %p3200_p3 }
  0x12   :  { %3210 = shalt.err (!%p3207_p7)
}
  0x13   :  { %s3309_s13 = smov 128   ;;  %s3310_s14 = smov 8  }
  0x14   :  { %39 = dma.hbm_to_vmem [thread:$0]  %s3781_s1, 512, %s34_s25, [#allocation6], %s3309_s13, %s3309_s13, %s3310_s14  }
  0x15   :  { %s3211_s19 = scalar_lea.hbm %s3780_s0, 1024 }
  0x16   :  { %p3212_p8 = scmp.ne.s32.totalorder %s3780_s0, %s3211_s19  ;;  %p3215_p9 = scmp.lt.u32.totalorder %s3211_s19, %s3780_s0 }
  0x18   :  { %p3217_p10 = pnand %p3215_p9, %p3212_p8 }
  0x1a   :  { %3220 = shalt.err (!%p3217_p10)
}
  0x1b   :  { %s3221_s24 = scalar_lea.vmem %s3360_s27, 1024  ;;  %p3226_p12 = scmp.lt.s32.totalorder %s3360_s27, %s3360_s27 }
  0x1c   :  { %p3222_p11 = scmp.ne.s32.totalorder %s3360_s27, %s3221_s24  ;;  %p3227_p13 = scmp.lt.s32.totalorder %s3221_s24, %s3221_s24 }
  0x1e   :  { %p3228_p0 = por %p3227_p13, %p3226_p12 }
  0x20   :  { %p3229_p1 = pnand %p3228_p0, %p3222_p11 }
  0x22   :  { %3232 = shalt.err (!%p3229_p1)
}
  0x23   :  { %27 = dma.hbm_to_vmem [thread:$0]  %s3780_s0, 1024, %s3360_s27, [#allocation3], %s3309_s13, %s3309_s13, %s3310_s14  }
  0x24   :  { %s3311_s26 = smov [#allocation7]   ;;  %s3312_s29 = smov [#allocation8]  }
  0x25   :  { %s47_s28 = sshll.u32 %s3311_s26, 4  ;;  %s61_s30 = sshll.u32 %s3312_s29, 4  ;;  %s48_s28 = int_to_ptr.vmem [resolvable:$true] %s47_s28  ;;  %s3397_s30 = int_to_ptr.vmem [resolvable:$true] %s61_s30 }
  0x26   :  { %s3233_s10 = scalar_lea.hbm %s3783_s3, 512 }
  0x27   :  { %p3234_p2 = scmp.ne.s32.totalorder %s3783_s3, %s3233_s10  ;;  %p3237_p3 = scmp.lt.u32.totalorder %s3233_s10, %s3783_s3 }
  0x29   :  { %p3239_p4 = pnand %p3237_p3, %p3234_p2 }
  0x2b   :  { %3242 = shalt.err (!%p3239_p4)
}
  0x2c   :  { %s3243_s0 = scalar_lea.vmem %s48_s28, 512  ;;  %p3248_p6 = scmp.lt.s32.totalorder %s48_s28, %s48_s28 }
  0x2d   :  { %p3244_p5 = scmp.ne.s32.totalorder %s48_s28, %s3243_s0  ;;  %p3249_p7 = scmp.lt.s32.totalorder %s3243_s0, %s3243_s0 }
  0x2f   :  { %p3250_p8 = por %p3249_p7, %p3248_p6 }
  0x31   :  { %p3251_p9 = pnand %p3250_p8, %p3244_p5 }
  0x33   :  { %3254 = shalt.err (!%p3251_p9)
}
  0x34   :  { %53 = dma.hbm_to_vmem [thread:$0]  %s3783_s3, 512, %s48_s28, [#allocation6], %s3309_s13, %s3309_s13, %s3310_s14  }
  0x35   :  { %s3255_s20 = scalar_lea.hbm %s3785_s5, 512 }
  0x36   :  { %p3256_p10 = scmp.ne.s32.totalorder %s3785_s5, %s3255_s20  ;;  %p3259_p11 = scmp.lt.u32.totalorder %s3255_s20, %s3785_s5 }
  0x38   :  { %p3261_p12 = pnand %p3259_p11, %p3256_p10 }
  0x3a   :  { %3264 = shalt.err (!%p3261_p12)
}
  0x3b   :  { %s3265_s1 = scalar_lea.vmem %s3397_s30, 512  ;;  %p3270_p0 = scmp.lt.s32.totalorder %s3397_s30, %s3397_s30 }
  0x3c   :  { %p3266_p13 = scmp.ne.s32.totalorder %s3397_s30, %s3265_s1  ;;  %p3271_p1 = scmp.lt.s32.totalorder %s3265_s1, %s3265_s1 }
  0x3e   :  { %p3272_p2 = por %p3271_p1, %p3270_p0 }
  0x40   :  { %p3273_p3 = pnand %p3272_p2, %p3266_p13 }
  0x42   :  { %3276 = shalt.err (!%p3273_p3)
}
  0x43   :  { %67 = dma.hbm_to_vmem [thread:$0]  %s3785_s5, 512, %s3397_s30, [#allocation9], %s3309_s13, %s3309_s13, %s3310_s14  }
  0x44   :  { %3299 = dma.done.wait [#allocation3], 1024  }
  0x45   :  { %3300 = vsyncadd [#allocation3], 4294966272 }
  0x46   :  { %3301 = dma.done.wait [#allocation6], 1024  }
  0x47   :  { %3302 = vsyncadd [#allocation6], 4294966272 }
  0x48   :  { %3303 = dma.done.wait [#allocation9], 512  }
  0x49   :  { %3304 = vsyncadd [#allocation9], 4294966784  ;;  %v3313_v0 = vmov 0.0|0.0   ;;  %vm3314_vm0 = vmmov 0   ;;  %v3315_v1 = vmov 0.0   ;;  %v82_v2 = vld [vmem:[#allocation5] sm:$0xff] }
  0x4a   :  { %2885 = vmatprep.subr.bf16.mxu0 %v3313_v0  ;;  %2629 = vmatprep.mubr.msk.f32.mxu0 %vm3314_vm0, %v3315_v1  ;;  %v83_v3 = vld [vmem:[#allocation5 + $0x8] sm:$0xff]  ;;  %v84_v4 = vld [vmem:[#allocation5 + $0x10] sm:$0xff]  ;;  %v85_v6 = vld [vmem:[#allocation5 + $0x18] sm:$0xff]  ;;  %vm104_vm1 = vcmask 261120   ;;  %s3316_s28 = smov 32   ;;  %s3317_s29 = smov 96  }
  0x4b   :  { %2891 = vmatprep.subr.bf16.mxu1 %v3313_v0  ;;  %2640 = vmatprep.mubr.msk.f32.mxu1 %vm3314_vm0, %v3315_v1  ;;  %v3440_v5 = vpack.c.bf16 %v83_v3, %v82_v2  ;;  %v3443_v7 = vpack.c.bf16 %v85_v6, %v84_v4  ;;  %v97_v8 = vld [vmem:[#allocation2] sm:$0xff]  ;;  %v88_v14 = vld [vmem:[#allocation7 + $0x8] sm:$0xff]  ;;  %v89_v15 = vld [vmem:[#allocation7 + $0x10] sm:$0xff]  ;;  %s3318_s9 = smov 64  }
  0x4c   :  { %v3454_v9 = vld [vmem:[%s3782_s2] ss:$0 sm:$0xff]  ;;  %v90_v17 = vld [vmem:[#allocation7 + $0x18] sm:$0xff]  ;;  %v93_v35 = vld [vmem:[#allocation8 + $0x8] sm:$0xff] }
  0x4d   :  { %2887 = vmatpush3.bf16.msra.mxu0 %v3440_v5  ;;  %v87_v13 = vld [vmem:[#allocation7] sm:$0xff]  ;;  %v3460_v18 = vpack.c.bf16 %v90_v17, %v89_v15  ;;  %v94_v36 = vld [vmem:[#allocation8 + $0x10] sm:$0xff]  ;;  %v95_v38 = vld [vmem:[#allocation8 + $0x18] sm:$0xff] }
  0x4e   :  { %2888 = vmatprep.subr.bf16.mxu0 %v3313_v0  ;;  %v3457_v16 = vpack.c.bf16 %v88_v14, %v87_v13  ;;  %v3477_v30 = vld [vmem:[%s3784_s4] ss:$0 sm:$0xff]  ;;  %v3483_v39 = vpack.c.bf16 %v95_v38, %v94_v36  ;;  %v402_v45 = vld [vmem:[#allocation2 + $0x8] sm:$0xff] }
  0x4f   :  { %v92_v34 = vld [vmem:[#allocation8] sm:$0xff] }
  0x50   :  { %2893 = vmatpush3.bf16.msra.mxu1 %v3457_v16  ;;  %v3480_v37 = vpack.c.bf16 %v93_v35, %v92_v34  ;;  %v3508_v52 = vld [vmem:[%s3786_s6] ss:$0 sm:$0xff] }
  0x51   :  { %2890 = vmatpush3.bf16.msra.mxu0 %v3443_v7  ;;  %2894 = vmatprep.subr.bf16.mxu1 %v3313_v0 }
  0x52   :  { %2897 = vmatprep.subr.bf16.mxu0 %v3313_v0 }
  0x54   :  { %2630 = vmatmul.mubr.msk.f32.vlgmr.msra.gmra.mrb[0].mxu0 %vm104_vm1, %v97_v8  ;;  %2896 = vmatpush3.bf16.msra.mxu1 %v3460_v18 }
  0x55   :  { %2651 = vmatprep.mubr.msk.f32.mxu0 %vm3314_vm0, %v3315_v1  ;;  %2903 = vmatprep.subr.bf16.mxu1 %v3313_v0 }
  0x56   :  { %2899 = vmatpush3.bf16.msra.mxu0 %v3480_v37 }
  0x57   :  { %2900 = vmatprep.subr.bf16.mxu0 %v3313_v0 }
  0x5a   :  { %2902 = vmatpush3.bf16.msra.mxu0 %v3483_v39 }
  0x5b   :  { %2909 = vmatprep.subr.bf16.mxu0 %v3313_v0 }
 0x127   :  { %v174_v10 = vpop.f32.mrb[0].mxu0 }
 0x128   :  { %v175_v11 = vadd.f32 %v3454_v9, %v174_v10  ;;  %v2631_v12 = vpop.f32.mrb[1].mxu0 }
 0x12a   :  { %3042 = vtanh.f32 %v175_v11  ;;  %v2452_v20 = vmul.f32 -1.442695, %v175_v11 }
 0x12c   :  { %3044 = vpow2.f32 %v2452_v20 }
 0x134   :  { %v3043_v19 = vpop.eup %3042 }
 0x135   :  { %186 = vrot.lane.b32.xlu0 %v3043_v19, %s3316_s28 }
 0x136   :  { %v3045_v21 = vpop.eup %3044 }
 0x137   :  { %v181_v22 = vadd.f32 1.0, %v3045_v21 }
 0x139   :  { %3046 = vrcp.f32 %v181_v22 }
 0x143   :  { %v3047_v23 = vpop.eup %3046 }
 0x144   :  { %v190_v24 = vsub.f32 1.0, %v3047_v23 }
 0x146   :  { %v191_v27 = vmul.f32 0.0, %v190_v24 }
 0x1a7   :  { %v187_v25 = vpop.permute.xlu0 %186 }
 0x1a8   :  { %v189_v26 = vmul.f32 %v3047_v23, %v187_v25 }
 0x1aa   :  { %v192_v28 = vadd.f32 %v191_v27, %v189_v26 }
 0x1ac   :  { %200 = vrot.lane.b32.xlu0 %v192_v28, %s3317_s29 }
 0x21e   :  { %v201_v29 = vpop.permute.xlu0 %200 }
 0x21f   :  { %2641 = vmatmul.mubr.msk.f32.vlgmr.msra.gmra.mrb[0].mxu1 %vm104_vm1, %v201_v29 }
 0x220   :  { %2905 = vmatpush3.bf16.msra.mxu1 %v3440_v5  ;;  %2662 = vmatprep.mubr.msk.f32.mxu1 %vm3314_vm0, %v3315_v1 }
 0x221   :  { %2906 = vmatprep.subr.bf16.mxu1 %v3313_v0 }
 0x224   :  { %2908 = vmatpush3.bf16.msra.mxu1 %v3443_v7 }
 0x225   :  { %2915 = vmatprep.subr.bf16.mxu1 %v3313_v0 }
 0x227   :  { %2663 = vmatmul.mubr.msk.f32.vlgmr.msra.gmra.mrb[2].mxu1 %vm104_vm1, %v402_v45 }
 0x228   :  { %2917 = vmatpush3.bf16.msra.mxu1 %v3480_v37  ;;  %2684 = vmatprep.mubr.msk.f32.mxu1 %vm3314_vm0, %v3315_v1 }
 0x229   :  { %2918 = vmatprep.subr.bf16.mxu1 %v3313_v0 }
 0x22c   :  { %2920 = vmatpush3.bf16.msra.mxu1 %v3483_v39 }
 0x22d   :  { %2927 = vmatprep.subr.bf16.mxu1 %v3313_v0 }
 0x2f2   :  { %v270_v31 = vpop.f32.mrb[0].mxu1 }
 0x2f3   :  { %v271_v32 = vadd.f32 %v3477_v30, %v270_v31  ;;  %v2642_v33 = vpop.f32.mrb[1].mxu1 }
 0x2f5   :  { %3048 = vtanh.f32 %v271_v32  ;;  %v2455_v41 = vmul.f32 -1.442695, %v271_v32 }
 0x2f7   :  { %3050 = vpow2.f32 %v2455_v41  ;;  %v692_v41 = vld [vmem:[#allocation2 + $0x10] sm:$0xff] }
 0x2fa   :  { %v472_v56 = vpop.f32.mrb[2].mxu1 }
 0x2fb   :  { %v473_v57 = vadd.f32 %v3454_v9, %v472_v56  ;;  %v2664_v58 = vpop.f32.mrb[3].mxu1 }
 0x2fd   :  { %v2460_v19 = vmul.f32 -1.442695, %v473_v57 }
 0x2ff   :  { %v3049_v40 = vpop.eup %3048 }
 0x300   :  { %282 = vrot.lane.b32.xlu1 %v3049_v40, %s3316_s28 }
 0x301   :  { %v3051_v42 = vpop.eup %3050 }
 0x302   :  { %v277_v43 = vadd.f32 1.0, %v3051_v42 }
 0x304   :  { %3052 = vrcp.f32 %v277_v43 }
 0x30e   :  { %v3053_v44 = vpop.eup %3052 }
 0x30f   :  { %v286_v46 = vsub.f32 1.0, %v3053_v44 }
 0x311   :  { %v287_v49 = vmul.f32 %v286_v46, %v192_v28 }
 0x372   :  { %v283_v47 = vpop.permute.xlu1 %282 }
 0x373   :  { %v285_v48 = vmul.f32 %v3053_v44, %v283_v47 }
 0x375   :  { %v288_v50 = vadd.f32 %v287_v49, %v285_v48 }
 0x377   :  { %301 = vrot.lane.b32.xlu1 %v288_v50, %s3317_s29 }
 0x37b   :  { %289 = vrot.lane.b32.xlu1 %v192_v28, %s3318_s9 }
 0x3e9   :  { %v302_v51 = vpop.permute.xlu1 %301 }
 0x3ea   :  { %2652 = vmatmul.mubr.msk.f32.vlgmr.msra.gmra.mrb[2].mxu0 %vm104_vm1, %v302_v51 }
 0x3eb   :  { %2911 = vmatpush3.bf16.msra.mxu0 %v3457_v16  ;;  %2673 = vmatprep.mubr.msk.f32.mxu0 %vm3314_vm0, %v3315_v1 }
 0x3ec   :  { %2912 = vmatprep.subr.bf16.mxu0 %v3313_v0 }
 0x3ed   :  { %v290_v11 = vpop.permute.xlu1 %289 }
 0x3ee   :  { %v292_v12 = vmul.f32 %v290_v11, %v286_v46 }
 0x3ef   :  { %2914 = vmatpush3.bf16.msra.mxu0 %v3460_v18 }
 0x3f0   :  { %2921 = vmatprep.subr.bf16.mxu0 %v3313_v0  ;;  %v293_v13 = vadd.f32 %v292_v12, %v285_v48 }
 0x4bd   :  { %v371_v53 = vpop.f32.mrb[2].mxu0 }
 0x4be   :  { %v372_v54 = vadd.f32 %v3508_v52, %v371_v53  ;;  %v2653_v55 = vpop.f32.mrb[3].mxu0 }
 0x4c0   :  { %3054 = vtanh.f32 %v372_v54  ;;  %v2458_v61 = vmul.f32 -1.442695, %v372_v54 }
 0x4c1   :  { %3056 = vtanh.f32 %v473_v57 }
 0x4c2   :  { %3058 = vpow2.f32 %v2458_v61 }
 0x4ca   :  { %v3055_v59 = vpop.eup %3054 }
 0x4cb   :  { %383 = vrot.lane.b32.xlu0 %v3055_v59, %s3316_s28  ;;  %v3057_v60 = vpop.eup %3056 }
 0x4cc   :  { %484 = vrot.lane.b32.xlu1 %v3057_v60, %s3316_s28  ;;  %v3059_v62 = vpop.eup %3058 }
 0x4cd   :  { %v378_v63 = vadd.f32 1.0, %v3059_v62 }
 0x4cf   :  { %3060 = vrcp.f32 %v378_v63 }
 0x4d0   :  { %3062 = vpow2.f32 %v2460_v19 }
 0x4d9   :  { %v3061_v2 = vpop.eup %3060 }
 0x4da   :  { %v387_v3 = vsub.f32 1.0, %v3061_v2  ;;  %v3063_v20 = vpop.eup %3062 }
 0x4db   :  { %v479_v21 = vadd.f32 1.0, %v3063_v20 }
 0x4dc   :  { %v388_v8 = vmul.f32 %v387_v3, %v288_v50 }
 0x4dd   :  { %3064 = vrcp.f32 %v479_v21 }
 0x4e7   :  { %v3065_v22 = vpop.eup %3064 }
 0x4e8   :  { %v488_v24 = vsub.f32 1.0, %v3065_v22 }
 0x53d   :  { %v384_v4 = vpop.permute.xlu0 %383 }
 0x53e   :  { %v386_v6 = vmul.f32 %v3061_v2, %v384_v4  ;;  %v485_v23 = vpop.permute.xlu1 %484 }
 0x53f   :  { %v487_v26 = vmul.f32 %v3065_v22, %v485_v23 }
 0x540   :  { %v389_v10 = vadd.f32 %v388_v8, %v386_v6 }
 0x542   :  { %391 = vrot.lane.b32.xlu0 %v389_v10, %s3318_s9 }
 0x5b4   :  { %v392_v14 = vpop.permute.xlu0 %391 }
 0x5b5   :  { %v394_v15 = vadd.f32 %v392_v14, %v293_v13 }
 0x5b7   :  { %v3515_v17 = vmul.f32 0.5, %v394_v15 }
 0x5b9   :  { %489 = vrot.lane.b32.xlu0 %v3515_v17, %s3318_s9 }
 0x62b   :  { %v490_v25 = vpop.permute.xlu0 %489 }
 0x62c   :  { %v492_v27 = vmul.f32 %v490_v25, %v488_v24 }
 0x62e   :  { %v493_v28 = vadd.f32 %v492_v27, %v487_v26 }
 0x630   :  { %495 = vrot.lane.b32.xlu1 %v493_v28, %s3317_s29 }
 0x6a2   :  { %v496_v29 = vpop.permute.xlu1 %495 }
 0x6a3   :  { %2674 = vmatmul.mubr.msk.f32.vlgmr.msra.gmra.mrb[4].mxu0 %vm104_vm1, %v496_v29 }
 0x6a4   :  { %2923 = vmatpush3.bf16.msra.mxu0 %v3440_v5  ;;  %2695 = vmatprep.mubr.msk.f32.mxu0 %vm3314_vm0, %v3315_v1 }
 0x6a5   :  { %2924 = vmatprep.subr.bf16.mxu0 %v3313_v0 }
 0x6a8   :  { %2926 = vmatpush3.bf16.msra.mxu0 %v3443_v7 }
 0x6a9   :  { %2933 = vmatprep.subr.bf16.mxu0 %v3313_v0 }
 0x6ab   :  { %2696 = vmatmul.mubr.msk.f32.vlgmr.msra.gmra.mrb[6].mxu0 %vm104_vm1, %v692_v41 }
 0x6ac   :  { %2935 = vmatpush3.bf16.msra.mxu0 %v3480_v37  ;;  %2717 = vmatprep.mubr.msk.f32.mxu0 %vm3314_vm0, %v3315_v1 }
 0x6ad   :  { %2936 = vmatprep.subr.bf16.mxu0 %v3313_v0 }
 0x6b0   :  { %2938 = vmatpush3.bf16.msra.mxu0 %v3483_v39 }
 0x6b1   :  { %2945 = vmatprep.subr.bf16.mxu0 %v3313_v0 }
 0x776   :  { %v565_v31 = vpop.f32.mrb[4].mxu0 }
 0x777   :  { %v566_v32 = vadd.f32 %v3477_v30, %v565_v31  ;;  %v2675_v33 = vpop.f32.mrb[5].mxu0 }
 0x779   :  { %3066 = vtanh.f32 %v566_v32  ;;  %v2462_v35 = vmul.f32 -1.442695, %v566_v32 }
 0x77b   :  { %3068 = vpow2.f32 %v2462_v35 }
 0x77e   :  { %v762_v51 = vpop.f32.mrb[6].mxu0 }
 0x77f   :  { %v763_v53 = vadd.f32 %v3454_v9, %v762_v51  ;;  %v2697_v54 = vpop.f32.mrb[7].mxu0 }
 0x781   :  { %v2466_v13 = vmul.f32 -1.442695, %v763_v53 }
 0x783   :  { %v3067_v34 = vpop.eup %3066 }
 0x784   :  { %577 = vrot.lane.b32.xlu0 %v3067_v34, %s3316_s28 }
 0x785   :  { %v3069_v36 = vpop.eup %3068 }
 0x786   :  { %v572_v38 = vadd.f32 1.0, %v3069_v36  ;;  %v982_v36 = vld [vmem:[#allocation2 + $0x18] sm:$0xff] }
 0x788   :  { %3070 = vrcp.f32 %v572_v38 }
 0x792   :  { %v3071_v40 = vpop.eup %3070 }
 0x793   :  { %v581_v42 = vsub.f32 1.0, %v3071_v40 }
 0x795   :  { %v582_v45 = vmul.f32 %v581_v42, %v493_v28 }
 0x7f6   :  { %v578_v43 = vpop.permute.xlu0 %577 }
 0x7f7   :  { %v580_v44 = vmul.f32 %v3071_v40, %v578_v43 }
 0x7f9   :  { %v583_v46 = vadd.f32 %v582_v45, %v580_v44 }
 0x7fb   :  { %590 = vrot.lane.b32.xlu1 %v583_v46, %s3317_s29 }
 0x7ff   :  { %584 = vrot.lane.b32.xlu1 %v493_v28, %s3318_s9 }
 0x86d   :  { %v591_v47 = vpop.permute.xlu1 %590 }
 0x86e   :  { %2685 = vmatmul.mubr.msk.f32.vlgmr.msra.gmra.mrb[4].mxu1 %vm104_vm1, %v591_v47 }
 0x86f   :  { %2929 = vmatpush3.bf16.msra.mxu1 %v3457_v16  ;;  %2706 = vmatprep.mubr.msk.f32.mxu1 %vm3314_vm0, %v3315_v1 }
 0x870   :  { %2930 = vmatprep.subr.bf16.mxu1 %v3313_v0 }
 0x871   :  { %v585_v4 = vpop.permute.xlu1 %584 }
 0x872   :  { %v587_v6 = vmul.f32 %v585_v4, %v581_v42 }
 0x873   :  { %2932 = vmatpush3.bf16.msra.mxu1 %v3460_v18 }
 0x874   :  { %2939 = vmatprep.subr.bf16.mxu1 %v3313_v0  ;;  %v588_v8 = vadd.f32 %v587_v6, %v580_v44 }
 0x941   :  { %v660_v48 = vpop.f32.mrb[4].mxu1 }
 0x942   :  { %v661_v49 = vadd.f32 %v3508_v52, %v660_v48  ;;  %v2686_v50 = vpop.f32.mrb[5].mxu1 }
 0x944   :  { %3072 = vtanh.f32 %v661_v49  ;;  %v2464_v57 = vmul.f32 -1.442695, %v661_v49 }
 0x945   :  { %3074 = vtanh.f32 %v763_v53 }
 0x946   :  { %3076 = vpow2.f32 %v2464_v57 }
 0x94e   :  { %v3073_v55 = vpop.eup %3072 }
 0x94f   :  { %672 = vrot.lane.b32.xlu0 %v3073_v55, %s3316_s28  ;;  %v3075_v56 = vpop.eup %3074 }
 0x950   :  { %774 = vrot.lane.b32.xlu1 %v3075_v56, %s3316_s28  ;;  %v3077_v58 = vpop.eup %3076 }
 0x951   :  { %v667_v59 = vadd.f32 1.0, %v3077_v58 }
 0x953   :  { %3078 = vrcp.f32 %v667_v59 }
 0x954   :  { %3080 = vpow2.f32 %v2466_v13 }
 0x95d   :  { %v3079_v60 = vpop.eup %3078 }
 0x95e   :  { %v676_v61 = vsub.f32 1.0, %v3079_v60  ;;  %v3081_v14 = vpop.eup %3080 }
 0x95f   :  { %v769_v15 = vadd.f32 1.0, %v3081_v14 }
 0x960   :  { %v677_v2 = vmul.f32 %v676_v61, %v583_v46 }
 0x961   :  { %3082 = vrcp.f32 %v769_v15 }
 0x96b   :  { %v3083_v19 = vpop.eup %3082 }
 0x96c   :  { %v778_v21 = vsub.f32 1.0, %v3083_v19 }
 0x9c1   :  { %v673_v62 = vpop.permute.xlu0 %672 }
 0x9c2   :  { %v675_v63 = vmul.f32 %v3079_v60, %v673_v62  ;;  %v775_v20 = vpop.permute.xlu1 %774 }
 0x9c3   :  { %v777_v23 = vmul.f32 %v3083_v19, %v775_v20 }
 0x9c4   :  { %v678_v3 = vadd.f32 %v677_v2, %v675_v63 }
 0x9c6   :  { %680 = vrot.lane.b32.xlu0 %v678_v3, %s3318_s9 }
 0xa38   :  { %v681_v10 = vpop.permute.xlu0 %680 }
 0xa39   :  { %v683_v11 = vadd.f32 %v681_v10, %v588_v8 }
 0xa3b   :  { %v3550_v12 = vmul.f32 0.5, %v683_v11 }
 0xa3d   :  { %779 = vrot.lane.b32.xlu0 %v3550_v12, %s3318_s9 }
 0xaaf   :  { %v780_v22 = vpop.permute.xlu0 %779 }
 0xab0   :  { %v782_v24 = vmul.f32 %v780_v22, %v778_v21 }
 0xab2   :  { %v783_v25 = vadd.f32 %v782_v24, %v777_v23 }
 0xab4   :  { %785 = vrot.lane.b32.xlu1 %v783_v25, %s3317_s29 }
 0xb26   :  { %v786_v26 = vpop.permute.xlu1 %785 }
 0xb27   :  { %2707 = vmatmul.mubr.msk.f32.vlgmr.msra.gmra.mrb[6].mxu1 %vm104_vm1, %v786_v26 }
 0xb28   :  { %2941 = vmatpush3.bf16.msra.mxu1 %v3440_v5  ;;  %2728 = vmatprep.mubr.msk.f32.mxu1 %vm3314_vm0, %v3315_v1 }
 0xb29   :  { %2942 = vmatprep.subr.bf16.mxu1 %v3313_v0 }
 0xb2c   :  { %2944 = vmatpush3.bf16.msra.mxu1 %v3443_v7 }
 0xb2d   :  { %2951 = vmatprep.subr.bf16.mxu1 %v3313_v0 }
 0xb2f   :  { %2729 = vmatmul.mubr.msk.f32.vlgmr.msra.gmra.mrb[8].mxu1 %vm104_vm1, %v982_v36 }
 0xb30   :  { %2953 = vmatpush3.bf16.msra.mxu1 %v3480_v37  ;;  %2750 = vmatprep.mubr.msk.f32.mxu1 %vm3314_vm0, %v3315_v1 }
 0xb31   :  { %2954 = vmatprep.subr.bf16.mxu1 %v3313_v0 }
 0xb34   :  { %2956 = vmatpush3.bf16.msra.mxu1 %v3483_v39 }
 0xb35   :  { %2963 = vmatprep.subr.bf16.mxu1 %v3313_v0 }
 0xbfa   :  { %v855_v27 = vpop.f32.mrb[6].mxu1 }
 0xbfb   :  { %v856_v28 = vadd.f32 %v3477_v30, %v855_v27  ;;  %v2708_v29 = vpop.f32.mrb[7].mxu1 }
 0xbfd   :  { %3084 = vtanh.f32 %v856_v28  ;;  %v2468_v32 = vmul.f32 -1.442695, %v856_v28 }
 0xbff   :  { %3086 = vpow2.f32 %v2468_v32 }
 0xc02   :  { %v1052_v48 = vpop.f32.mrb[8].mxu1 }
 0xc03   :  { %v1053_v49 = vadd.f32 %v3454_v9, %v1052_v48  ;;  %v2730_v50 = vpop.f32.mrb[9].mxu1 }
 0xc05   :  { %v2472_v10 = vmul.f32 -1.442695, %v1053_v49 }
 0xc07   :  { %v3085_v31 = vpop.eup %3084 }
 0xc08   :  { %867 = vrot.lane.b32.xlu0 %v3085_v31, %s3316_s28 }
 0xc09   :  { %v3087_v33 = vpop.eup %3086 }
 0xc0a   :  { %v862_v34 = vadd.f32 1.0, %v3087_v33 }
 0xc0c   :  { %3088 = vrcp.f32 %v862_v34  ;;  %v1272_v34 = vld [vmem:[#allocation2 + $0x20] sm:$0xff] }
 0xc16   :  { %v3089_v35 = vpop.eup %3088 }
 0xc17   :  { %v871_v38 = vsub.f32 1.0, %v3089_v35 }
 0xc19   :  { %v872_v42 = vmul.f32 %v871_v38, %v783_v25 }
 0xc7a   :  { %v868_v40 = vpop.permute.xlu0 %867 }
 0xc7b   :  { %v870_v41 = vmul.f32 %v3089_v35, %v868_v40 }
 0xc7d   :  { %v873_v43 = vadd.f32 %v872_v42, %v870_v41 }
 0xc7f   :  { %880 = vrot.lane.b32.xlu1 %v873_v43, %s3317_s29 }
 0xc83   :  { %874 = vrot.lane.b32.xlu1 %v783_v25, %s3318_s9 }
 0xcf1   :  { %v881_v44 = vpop.permute.xlu1 %880 }
 0xcf2   :  { %2718 = vmatmul.mubr.msk.f32.vlgmr.msra.gmra.mrb[8].mxu0 %vm104_vm1, %v881_v44 }
 0xcf3   :  { %2947 = vmatpush3.bf16.msra.mxu0 %v3457_v16  ;;  %2739 = vmatprep.mubr.msk.f32.mxu0 %vm3314_vm0, %v3315_v1 }
 0xcf4   :  { %2948 = vmatprep.subr.bf16.mxu0 %v3313_v0 }
 0xcf5   :  { %v875_v63 = vpop.permute.xlu1 %874 }
 0xcf6   :  { %v877_v2 = vmul.f32 %v875_v63, %v871_v38 }
 0xcf7   :  { %2950 = vmatpush3.bf16.msra.mxu0 %v3460_v18 }
 0xcf8   :  { %2957 = vmatprep.subr.bf16.mxu0 %v3313_v0  ;;  %v878_v3 = vadd.f32 %v877_v2, %v870_v41 }
 0xdc5   :  { %v950_v45 = vpop.f32.mrb[8].mxu0 }
 0xdc6   :  { %v951_v46 = vadd.f32 %v3508_v52, %v950_v45  ;;  %v2719_v47 = vpop.f32.mrb[9].mxu0 }
 0xdc8   :  { %3090 = vtanh.f32 %v951_v46  ;;  %v2470_v54 = vmul.f32 -1.442695, %v951_v46 }
 0xdc9   :  { %3092 = vtanh.f32 %v1053_v49 }
 0xdca   :  { %3094 = vpow2.f32 %v2470_v54 }
 0xdd2   :  { %v3091_v51 = vpop.eup %3090 }
 0xdd3   :  { %962 = vrot.lane.b32.xlu0 %v3091_v51, %s3316_s28  ;;  %v3093_v53 = vpop.eup %3092 }
 0xdd4   :  { %1064 = vrot.lane.b32.xlu1 %v3093_v53, %s3316_s28  ;;  %v3095_v55 = vpop.eup %3094 }
 0xdd5   :  { %v957_v56 = vadd.f32 1.0, %v3095_v55 }
 0xdd7   :  { %3096 = vrcp.f32 %v957_v56 }
 0xdd8   :  { %3098 = vpow2.f32 %v2472_v10 }
 0xde1   :  { %v3097_v57 = vpop.eup %3096 }
 0xde2   :  { %v966_v58 = vsub.f32 1.0, %v3097_v57  ;;  %v3099_v11 = vpop.eup %3098 }
 0xde3   :  { %v1059_v13 = vadd.f32 1.0, %v3099_v11 }
 0xde4   :  { %v967_v61 = vmul.f32 %v966_v58, %v873_v43 }
 0xde5   :  { %3100 = vrcp.f32 %v1059_v13 }
 0xdef   :  { %v3101_v14 = vpop.eup %3100 }
 0xdf0   :  { %v1068_v19 = vsub.f32 1.0, %v3101_v14 }
 0xe45   :  { %v963_v59 = vpop.permute.xlu0 %962 }
 0xe46   :  { %v965_v60 = vmul.f32 %v3097_v57, %v963_v59  ;;  %v1065_v15 = vpop.permute.xlu1 %1064 }
 0xe47   :  { %v1067_v21 = vmul.f32 %v3101_v14, %v1065_v15 }
 0xe48   :  { %v968_v62 = vadd.f32 %v967_v61, %v965_v60 }
 0xe4a   :  { %970 = vrot.lane.b32.xlu0 %v968_v62, %s3318_s9 }
 0xebc   :  { %v971_v4 = vpop.permute.xlu0 %970 }
 0xebd   :  { %v973_v6 = vadd.f32 %v971_v4, %v878_v3 }
 0xebf   :  { %v3585_v8 = vmul.f32 0.5, %v973_v6 }
 0xec1   :  { %1069 = vrot.lane.b32.xlu0 %v3585_v8, %s3318_s9 }
 0xf33   :  { %v1070_v20 = vpop.permute.xlu0 %1069 }
 0xf34   :  { %v1072_v22 = vmul.f32 %v1070_v20, %v1068_v19 }
 0xf36   :  { %v1073_v23 = vadd.f32 %v1072_v22, %v1067_v21 }
 0xf38   :  { %1075 = vrot.lane.b32.xlu1 %v1073_v23, %s3317_s29 }
 0xfaa   :  { %v1076_v24 = vpop.permute.xlu1 %1075 }
 0xfab   :  { %2740 = vmatmul.mubr.msk.f32.vlgmr.msra.gmra.mrb[10].mxu0 %vm104_vm1, %v1076_v24 }
 0xfac   :  { %2959 = vmatpush3.bf16.msra.mxu0 %v3440_v5  ;;  %2761 = vmatprep.mubr.msk.f32.mxu0 %vm3314_vm0, %v3315_v1 }
 0xfad   :  { %2960 = vmatprep.subr.bf16.mxu0 %v3313_v0 }
 0xfb0   :  { %2962 = vmatpush3.bf16.msra.mxu0 %v3443_v7 }
 0xfb1   :  { %2969 = vmatprep.subr.bf16.mxu0 %v3313_v0 }
 0xfb3   :  { %2762 = vmatmul.mubr.msk.f32.vlgmr.msra.gmra.mrb[12].mxu0 %vm104_vm1, %v1272_v34 }
 0xfb4   :  { %2971 = vmatpush3.bf16.msra.mxu0 %v3480_v37  ;;  %2783 = vmatprep.mubr.msk.f32.mxu0 %vm3314_vm0, %v3315_v1 }
 0xfb5   :  { %2972 = vmatprep.subr.bf16.mxu0 %v3313_v0 }
 0xfb8   :  { %2974 = vmatpush3.bf16.msra.mxu0 %v3483_v39 }
 0xfb9   :  { %2981 = vmatprep.subr.bf16.mxu0 %v3313_v0 }
0x107e   :  { %v1145_v25 = vpop.f32.mrb[10].mxu0 }
0x107f   :  { %v1146_v26 = vadd.f32 %v3477_v30, %v1145_v25  ;;  %v2741_v27 = vpop.f32.mrb[11].mxu0 }
0x1081   :  { %3102 = vtanh.f32 %v1146_v26  ;;  %v2474_v29 = vmul.f32 -1.442695, %v1146_v26 }
0x1083   :  { %3104 = vpow2.f32 %v2474_v29 }
0x1086   :  { %v1342_v46 = vpop.f32.mrb[12].mxu0 }
0x1087   :  { %v1343_v47 = vadd.f32 %v3454_v9, %v1342_v46  ;;  %v2763_v48 = vpop.f32.mrb[13].mxu0 }
0x1089   :  { %v2478_v6 = vmul.f32 -1.442695, %v1343_v47 }
0x108b   :  { %v3103_v28 = vpop.eup %3102 }
0x108c   :  { %1157 = vrot.lane.b32.xlu0 %v3103_v28, %s3316_s28 }
0x108d   :  { %v3105_v31 = vpop.eup %3104 }
0x108e   :  { %v1152_v32 = vadd.f32 1.0, %v3105_v31 }
0x1090   :  { %3106 = vrcp.f32 %v1152_v32 }
0x109a   :  { %v3107_v33 = vpop.eup %3106 }
0x109b   :  { %v1161_v35 = vsub.f32 1.0, %v3107_v33 }
0x109d   :  { %v1162_v40 = vmul.f32 %v1161_v35, %v1073_v23 }
0x10fe   :  { %v1158_v36 = vpop.permute.xlu0 %1157 }
0x10ff   :  { %v1160_v38 = vmul.f32 %v3107_v33, %v1158_v36  ;;  %v1562_v33 = vld [vmem:[#allocation2 + $0x28] sm:$0xff] }
0x1101   :  { %v1163_v41 = vadd.f32 %v1162_v40, %v1160_v38 }
0x1103   :  { %1170 = vrot.lane.b32.xlu1 %v1163_v41, %s3317_s29 }
0x1107   :  { %1164 = vrot.lane.b32.xlu1 %v1073_v23, %s3318_s9 }
0x1175   :  { %v1171_v42 = vpop.permute.xlu1 %1170 }
0x1176   :  { %2751 = vmatmul.mubr.msk.f32.vlgmr.msra.gmra.mrb[10].mxu1 %vm104_vm1, %v1171_v42 }
0x1177   :  { %2965 = vmatpush3.bf16.msra.mxu1 %v3457_v16  ;;  %2772 = vmatprep.mubr.msk.f32.mxu1 %vm3314_vm0, %v3315_v1 }
0x1178   :  { %2966 = vmatprep.subr.bf16.mxu1 %v3313_v0 }
0x1179   :  { %v1165_v61 = vpop.permute.xlu1 %1164 }
0x117a   :  { %v1167_v62 = vmul.f32 %v1165_v61, %v1161_v35 }
0x117b   :  { %2968 = vmatpush3.bf16.msra.mxu1 %v3460_v18 }
0x117c   :  { %2975 = vmatprep.subr.bf16.mxu1 %v3313_v0  ;;  %v1168_v63 = vadd.f32 %v1167_v62, %v1160_v38 }
0x1249   :  { %v1240_v43 = vpop.f32.mrb[10].mxu1 }
0x124a   :  { %v1241_v44 = vadd.f32 %v3508_v52, %v1240_v43  ;;  %v2752_v45 = vpop.f32.mrb[11].mxu1 }
0x124c   :  { %3108 = vtanh.f32 %v1241_v44  ;;  %v2476_v51 = vmul.f32 -1.442695, %v1241_v44 }
0x124d   :  { %3110 = vtanh.f32 %v1343_v47 }
0x124e   :  { %3112 = vpow2.f32 %v2476_v51 }
0x1256   :  { %v3109_v49 = vpop.eup %3108 }
0x1257   :  { %1252 = vrot.lane.b32.xlu0 %v3109_v49, %s3316_s28  ;;  %v3111_v50 = vpop.eup %3110 }
0x1258   :  { %1354 = vrot.lane.b32.xlu1 %v3111_v50, %s3316_s28  ;;  %v3113_v53 = vpop.eup %3112 }
0x1259   :  { %v1247_v54 = vadd.f32 1.0, %v3113_v53 }
0x125b   :  { %3114 = vrcp.f32 %v1247_v54 }
0x125c   :  { %3116 = vpow2.f32 %v2478_v6 }
0x1265   :  { %v3115_v55 = vpop.eup %3114 }
0x1266   :  { %v1256_v56 = vsub.f32 1.0, %v3115_v55  ;;  %v3117_v10 = vpop.eup %3116 }
0x1267   :  { %v1349_v11 = vadd.f32 1.0, %v3117_v10 }
0x1268   :  { %v1257_v59 = vmul.f32 %v1256_v56, %v1163_v41 }
0x1269   :  { %3118 = vrcp.f32 %v1349_v11 }
0x1273   :  { %v3119_v13 = vpop.eup %3118 }
0x1274   :  { %v1358_v15 = vsub.f32 1.0, %v3119_v13 }
0x12c9   :  { %v1253_v57 = vpop.permute.xlu0 %1252 }
0x12ca   :  { %v1255_v58 = vmul.f32 %v3115_v55, %v1253_v57  ;;  %v1355_v14 = vpop.permute.xlu1 %1354 }
0x12cb   :  { %v1357_v20 = vmul.f32 %v3119_v13, %v1355_v14 }
0x12cc   :  { %v1258_v60 = vadd.f32 %v1257_v59, %v1255_v58 }
0x12ce   :  { %1260 = vrot.lane.b32.xlu0 %v1258_v60, %s3318_s9 }
0x1340   :  { %v1261_v2 = vpop.permute.xlu0 %1260 }
0x1341   :  { %v1263_v3 = vadd.f32 %v1261_v2, %v1168_v63 }
0x1343   :  { %v3620_v4 = vmul.f32 0.5, %v1263_v3 }
0x1345   :  { %1359 = vrot.lane.b32.xlu0 %v3620_v4, %s3318_s9 }
0x13b7   :  { %v1360_v19 = vpop.permute.xlu0 %1359 }
0x13b8   :  { %v1362_v21 = vmul.f32 %v1360_v19, %v1358_v15 }
0x13ba   :  { %v1363_v22 = vadd.f32 %v1362_v21, %v1357_v20 }
0x13bc   :  { %1365 = vrot.lane.b32.xlu1 %v1363_v22, %s3317_s29 }
0x142e   :  { %v1366_v23 = vpop.permute.xlu1 %1365 }
0x142f   :  { %2773 = vmatmul.mubr.msk.f32.vlgmr.msra.gmra.mrb[12].mxu1 %vm104_vm1, %v1366_v23 }
0x1430   :  { %2977 = vmatpush3.bf16.msra.mxu1 %v3440_v5  ;;  %2794 = vmatprep.mubr.msk.f32.mxu1 %vm3314_vm0, %v3315_v1 }
0x1431   :  { %2978 = vmatprep.subr.bf16.mxu1 %v3313_v0 }
0x1434   :  { %2980 = vmatpush3.bf16.msra.mxu1 %v3443_v7 }
0x1435   :  { %2987 = vmatprep.subr.bf16.mxu1 %v3313_v0 }
0x1437   :  { %2795 = vmatmul.mubr.msk.f32.vlgmr.msra.gmra.mrb[14].mxu1 %vm104_vm1, %v1562_v33  ;;  %v1852_v33 = vld [vmem:[#allocation2 + $0x30] sm:$0xff] }
0x1438   :  { %2989 = vmatpush3.bf16.msra.mxu1 %v3480_v37  ;;  %2816 = vmatprep.mubr.msk.f32.mxu1 %vm3314_vm0, %v3315_v1 }
0x1439   :  { %2990 = vmatprep.subr.bf16.mxu1 %v3313_v0 }
0x143c   :  { %2992 = vmatpush3.bf16.msra.mxu1 %v3483_v39 }
0x143d   :  { %2999 = vmatprep.subr.bf16.mxu1 %v3313_v0 }
0x1502   :  { %v1435_v24 = vpop.f32.mrb[12].mxu1 }
0x1503   :  { %v1436_v25 = vadd.f32 %v3477_v30, %v1435_v24  ;;  %v2774_v26 = vpop.f32.mrb[13].mxu1 }
0x1505   :  { %3120 = vtanh.f32 %v1436_v25  ;;  %v2480_v28 = vmul.f32 -1.442695, %v1436_v25 }
0x1507   :  { %3122 = vpow2.f32 %v2480_v28 }
0x150a   :  { %v1632_v45 = vpop.f32.mrb[14].mxu1 }
0x150b   :  { %v1633_v46 = vadd.f32 %v3454_v9, %v1632_v45  ;;  %v2796_v47 = vpop.f32.mrb[15].mxu1 }
0x150d   :  { %v2484_v6 = vmul.f32 -1.442695, %v1633_v46 }
0x150f   :  { %v3121_v27 = vpop.eup %3120 }
0x1510   :  { %1447 = vrot.lane.b32.xlu0 %v3121_v27, %s3316_s28 }
0x1511   :  { %v3123_v29 = vpop.eup %3122 }
0x1512   :  { %v1442_v31 = vadd.f32 1.0, %v3123_v29 }
0x1514   :  { %3124 = vrcp.f32 %v1442_v31 }
0x151e   :  { %v3125_v32 = vpop.eup %3124 }
0x151f   :  { %v1451_v34 = vsub.f32 1.0, %v3125_v32 }
0x1521   :  { %v1452_v38 = vmul.f32 %v1451_v34, %v1363_v22 }
0x1582   :  { %v1448_v35 = vpop.permute.xlu0 %1447 }
0x1583   :  { %v1450_v36 = vmul.f32 %v3125_v32, %v1448_v35 }
0x1585   :  { %v1453_v40 = vadd.f32 %v1452_v38, %v1450_v36 }
0x1587   :  { %1460 = vrot.lane.b32.xlu1 %v1453_v40, %s3317_s29 }
0x158b   :  { %1454 = vrot.lane.b32.xlu1 %v1363_v22, %s3318_s9 }
0x15f9   :  { %v1461_v41 = vpop.permute.xlu1 %1460 }
0x15fa   :  { %2784 = vmatmul.mubr.msk.f32.vlgmr.msra.gmra.mrb[14].mxu0 %vm104_vm1, %v1461_v41 }
0x15fb   :  { %2983 = vmatpush3.bf16.msra.mxu0 %v3457_v16  ;;  %2805 = vmatprep.mubr.msk.f32.mxu0 %vm3314_vm0, %v3315_v1 }
0x15fc   :  { %2984 = vmatprep.subr.bf16.mxu0 %v3313_v0 }
0x15fd   :  { %v1455_v60 = vpop.permute.xlu1 %1454 }
0x15fe   :  { %v1457_v61 = vmul.f32 %v1455_v60, %v1451_v34 }
0x15ff   :  { %2986 = vmatpush3.bf16.msra.mxu0 %v3460_v18 }
0x1600   :  { %2993 = vmatprep.subr.bf16.mxu0 %v3313_v0  ;;  %v1458_v62 = vadd.f32 %v1457_v61, %v1450_v36 }
0x16cd   :  { %v1530_v42 = vpop.f32.mrb[14].mxu0 }
0x16ce   :  { %v1531_v43 = vadd.f32 %v3508_v52, %v1530_v42  ;;  %v2785_v44 = vpop.f32.mrb[15].mxu0 }
0x16d0   :  { %3126 = vtanh.f32 %v1531_v43  ;;  %v2482_v50 = vmul.f32 -1.442695, %v1531_v43 }
0x16d1   :  { %3128 = vtanh.f32 %v1633_v46 }
0x16d2   :  { %3130 = vpow2.f32 %v2482_v50 }
0x16da   :  { %v3127_v48 = vpop.eup %3126 }
0x16db   :  { %1542 = vrot.lane.b32.xlu0 %v3127_v48, %s3316_s28  ;;  %v3129_v49 = vpop.eup %3128 }
0x16dc   :  { %1644 = vrot.lane.b32.xlu1 %v3129_v49, %s3316_s28  ;;  %v3131_v51 = vpop.eup %3130 }
0x16dd   :  { %v1537_v53 = vadd.f32 1.0, %v3131_v51 }
0x16df   :  { %3132 = vrcp.f32 %v1537_v53 }
0x16e0   :  { %3134 = vpow2.f32 %v2484_v6 }
0x16e9   :  { %v3133_v54 = vpop.eup %3132 }
0x16ea   :  { %v1546_v55 = vsub.f32 1.0, %v3133_v54  ;;  %v3135_v10 = vpop.eup %3134 }
0x16eb   :  { %v1639_v11 = vadd.f32 1.0, %v3135_v10 }
0x16ec   :  { %v1547_v58 = vmul.f32 %v1546_v55, %v1453_v40 }
0x16ed   :  { %3136 = vrcp.f32 %v1639_v11 }
0x16f7   :  { %v3137_v13 = vpop.eup %3136 }
0x16f8   :  { %v1648_v15 = vsub.f32 1.0, %v3137_v13 }
0x174d   :  { %v1543_v56 = vpop.permute.xlu0 %1542 }
0x174e   :  { %v1545_v57 = vmul.f32 %v3133_v54, %v1543_v56  ;;  %v1645_v14 = vpop.permute.xlu1 %1644 }
0x174f   :  { %v1647_v20 = vmul.f32 %v3137_v13, %v1645_v14 }
0x1750   :  { %v1548_v59 = vadd.f32 %v1547_v58, %v1545_v57 }
0x1752   :  { %1550 = vrot.lane.b32.xlu0 %v1548_v59, %s3318_s9 }
0x17c4   :  { %v1551_v63 = vpop.permute.xlu0 %1550 }
0x17c5   :  { %v1553_v2 = vadd.f32 %v1551_v63, %v1458_v62 }
0x17c7   :  { %v3655_v3 = vmul.f32 0.5, %v1553_v2 }
0x17c9   :  { %1649 = vrot.lane.b32.xlu0 %v3655_v3, %s3318_s9 }
0x183b   :  { %v1650_v19 = vpop.permute.xlu0 %1649 }
0x183c   :  { %v1652_v21 = vmul.f32 %v1650_v19, %v1648_v15 }
0x183e   :  { %v1653_v22 = vadd.f32 %v1652_v21, %v1647_v20 }
0x1840   :  { %1655 = vrot.lane.b32.xlu1 %v1653_v22, %s3317_s29 }
0x18b2   :  { %v1656_v23 = vpop.permute.xlu1 %1655 }
0x18b3   :  { %2806 = vmatmul.mubr.msk.f32.vlgmr.msra.gmra.mrb[16].mxu0 %vm104_vm1, %v1656_v23 }
0x18b4   :  { %2995 = vmatpush3.bf16.msra.mxu0 %v3440_v5  ;;  %2827 = vmatprep.mubr.msk.f32.mxu0 %vm3314_vm0, %v3315_v1 }
0x18b5   :  { %2996 = vmatprep.subr.bf16.mxu0 %v3313_v0 }
0x18b8   :  { %2998 = vmatpush3.bf16.msra.mxu0 %v3443_v7 }
0x18b9   :  { %3005 = vmatprep.subr.bf16.mxu0 %v3313_v0 }
0x18bb   :  { %2828 = vmatmul.mubr.msk.f32.vlgmr.msra.gmra.mrb[18].mxu0 %vm104_vm1, %v1852_v33 }
0x18bc   :  { %3007 = vmatpush3.bf16.msra.mxu0 %v3480_v37  ;;  %2849 = vmatprep.mubr.msk.f32.mxu0 %vm3314_vm0, %v3315_v1 }
0x18bd   :  { %3008 = vmatprep.subr.bf16.mxu0 %v3313_v0 }
0x18c0   :  { %3010 = vmatpush3.bf16.msra.mxu0 %v3483_v39 }
0x18c1   :  { %3017 = vmatprep.subr.bf16.mxu0 %v3313_v0 }
0x1986   :  { %v1725_v24 = vpop.f32.mrb[16].mxu0 }
0x1987   :  { %v1726_v25 = vadd.f32 %v3477_v30, %v1725_v24  ;;  %v2807_v26 = vpop.f32.mrb[17].mxu0  ;;  %v3705_v24 = vld [vmem:[%s3784_s4] ss:$0 sm:$0xff] }
0x1989   :  { %3138 = vtanh.f32 %v1726_v25  ;;  %v2486_v28 = vmul.f32 -1.442695, %v1726_v25 }
0x198b   :  { %3140 = vpow2.f32 %v2486_v28 }
0x198e   :  { %v1922_v44 = vpop.f32.mrb[18].mxu0 }
0x198f   :  { %v1923_v45 = vadd.f32 %v3454_v9, %v1922_v44  ;;  %v2829_v46 = vpop.f32.mrb[19].mxu0 }
0x1991   :  { %v2490_v2 = vmul.f32 -1.442695, %v1923_v45 }
0x1993   :  { %v3139_v27 = vpop.eup %3138 }
0x1994   :  { %1737 = vrot.lane.b32.xlu0 %v3139_v27, %s3316_s28 }
0x1995   :  { %v3141_v29 = vpop.eup %3140 }
0x1996   :  { %v1732_v31 = vadd.f32 1.0, %v3141_v29 }
0x1998   :  { %3142 = vrcp.f32 %v1732_v31  ;;  %v2142_v31 = vld [vmem:[#allocation2 + $0x38] sm:$0xff] }
0x19a2   :  { %v3143_v32 = vpop.eup %3142 }
0x19a3   :  { %v1741_v34 = vsub.f32 1.0, %v3143_v32 }
0x19a5   :  { %v1742_v36 = vmul.f32 %v1741_v34, %v1653_v22 }
0x1a06   :  { %v1738_v30 = vpop.permute.xlu0 %1737 }
0x1a07   :  { %v1740_v35 = vmul.f32 %v3143_v32, %v1738_v30 }
0x1a09   :  { %v1743_v38 = vadd.f32 %v1742_v36, %v1740_v35 }
0x1a0b   :  { %1750 = vrot.lane.b32.xlu1 %v1743_v38, %s3317_s29 }
0x1a0f   :  { %1744 = vrot.lane.b32.xlu1 %v1653_v22, %s3318_s9 }
0x1a7d   :  { %v1751_v40 = vpop.permute.xlu1 %1750 }
0x1a7e   :  { %2817 = vmatmul.mubr.msk.f32.vlgmr.msra.gmra.mrb[16].mxu1 %vm104_vm1, %v1751_v40 }
0x1a7f   :  { %3001 = vmatpush3.bf16.msra.mxu1 %v3457_v16  ;;  %2838 = vmatprep.mubr.msk.f32.mxu1 %vm3314_vm0, %v3315_v1 }
0x1a80   :  { %3002 = vmatprep.subr.bf16.mxu1 %v3313_v0 }
0x1a81   :  { %v1745_v9 = vpop.permute.xlu1 %1744 }
0x1a82   :  { %v1747_v59 = vmul.f32 %v1745_v9, %v1741_v34 }
0x1a83   :  { %3004 = vmatpush3.bf16.msra.mxu1 %v3460_v18 }
0x1a84   :  { %3011 = vmatprep.subr.bf16.mxu1 %v3313_v0  ;;  %v1748_v60 = vadd.f32 %v1747_v59, %v1740_v35 }
0x1b51   :  { %v1820_v41 = vpop.f32.mrb[16].mxu1 }
0x1b52   :  { %v1821_v42 = vadd.f32 %v3508_v52, %v1820_v41  ;;  %v2818_v43 = vpop.f32.mrb[17].mxu1  ;;  %v3187_v41 = vld [vmem:[%s3782_s2] ss:$0 sm:$0xff] }
0x1b54   :  { %3144 = vtanh.f32 %v1821_v42  ;;  %v2488_v49 = vmul.f32 -1.442695, %v1821_v42 }
0x1b55   :  { %3146 = vtanh.f32 %v1923_v45 }
0x1b56   :  { %3148 = vpow2.f32 %v2488_v49 }
0x1b5e   :  { %v3145_v47 = vpop.eup %3144 }
0x1b5f   :  { %1832 = vrot.lane.b32.xlu0 %v3145_v47, %s3316_s28  ;;  %v3147_v48 = vpop.eup %3146 }
0x1b60   :  { %1934 = vrot.lane.b32.xlu1 %v3147_v48, %s3316_s28  ;;  %v3149_v50 = vpop.eup %3148 }
0x1b61   :  { %v1827_v51 = vadd.f32 1.0, %v3149_v50 }
0x1b63   :  { %3150 = vrcp.f32 %v1827_v51 }
0x1b64   :  { %3152 = vpow2.f32 %v2490_v2 }
0x1b6d   :  { %v3151_v53 = vpop.eup %3150 }
0x1b6e   :  { %v1836_v54 = vsub.f32 1.0, %v3151_v53  ;;  %v3153_v6 = vpop.eup %3152 }
0x1b6f   :  { %v1929_v10 = vadd.f32 1.0, %v3153_v6 }
0x1b70   :  { %v1837_v57 = vmul.f32 %v1836_v54, %v1743_v38 }
0x1b71   :  { %3154 = vrcp.f32 %v1929_v10 }
0x1b7b   :  { %v3155_v11 = vpop.eup %3154 }
0x1b7c   :  { %v1938_v14 = vsub.f32 1.0, %v3155_v11 }
0x1bd1   :  { %v1833_v55 = vpop.permute.xlu0 %1832 }
0x1bd2   :  { %v1835_v56 = vmul.f32 %v3151_v53, %v1833_v55  ;;  %v1935_v13 = vpop.permute.xlu1 %1934 }
0x1bd3   :  { %v1937_v19 = vmul.f32 %v3155_v11, %v1935_v13 }
0x1bd4   :  { %v1838_v58 = vadd.f32 %v1837_v57, %v1835_v56 }
0x1bd6   :  { %1840 = vrot.lane.b32.xlu0 %v1838_v58, %s3318_s9 }
0x1c48   :  { %v1841_v61 = vpop.permute.xlu0 %1840 }
0x1c49   :  { %v1843_v62 = vadd.f32 %v1841_v61, %v1748_v60 }
0x1c4b   :  { %v3690_v63 = vmul.f32 0.5, %v1843_v62 }
0x1c4d   :  { %1939 = vrot.lane.b32.xlu0 %v3690_v63, %s3318_s9 }
0x1cbf   :  { %v1940_v15 = vpop.permute.xlu0 %1939 }
0x1cc0   :  { %v1942_v20 = vmul.f32 %v1940_v15, %v1938_v14 }
0x1cc2   :  { %v1943_v21 = vadd.f32 %v1942_v20, %v1937_v19 }
0x1cc4   :  { %1945 = vrot.lane.b32.xlu1 %v1943_v21, %s3317_s29 }
0x1d36   :  { %v1946_v22 = vpop.permute.xlu1 %1945 }
0x1d37   :  { %2839 = vmatmul.mubr.msk.f32.vlgmr.msra.gmra.mrb[18].mxu1 %vm104_vm1, %v1946_v22 }
0x1d38   :  { %3013 = vmatpush3.bf16.msra.mxu1 %v3440_v5  ;;  %2860 = vmatprep.mubr.msk.f32.mxu1 %vm3314_vm0, %v3315_v1 }
0x1d39   :  { %3014 = vmatprep.subr.bf16.mxu1 %v3313_v0 }
0x1d3c   :  { %3016 = vmatpush3.bf16.msra.mxu1 %v3443_v7 }
0x1d3d   :  { %3023 = vmatprep.subr.bf16.mxu1 %v3313_v0 }
0x1d3f   :  { %2861 = vmatmul.mubr.msk.f32.vlgmr.msra.gmra.mrb[20].mxu1 %vm104_vm1, %v2142_v31 }
0x1d40   :  { %3025 = vmatpush3.bf16.msra.mxu1 %v3480_v37  ;;  %2882 = vmatprep.mubr.msk.f32.mxu1 %vm3314_vm0, %v3315_v1 }
0x1d41   :  { %3026 = vmatprep.subr.bf16.mxu1 %v3313_v0 }
0x1d44   :  { %3028 = vmatpush3.bf16.msra.mxu1 %v3483_v39 }
0x1e0a   :  { %v2015_v23 = vpop.f32.mrb[18].mxu1 }
0x1e0b   :  { %v2016_v25 = vadd.f32 %v3705_v24, %v2015_v23  ;;  %v2840_v26 = vpop.f32.mrb[19].mxu1 }
0x1e0d   :  { %3156 = vtanh.f32 %v2016_v25  ;;  %v2492_v27 = vmul.f32 -1.442695, %v2016_v25 }
0x1e0f   :  { %3158 = vpow2.f32 %v2492_v27 }
0x1e12   :  { %v2212_v40 = vpop.f32.mrb[20].mxu1 }
0x1e13   :  { %v2213_v42 = vadd.f32 %v3187_v41, %v2212_v40  ;;  %v2862_v43 = vpop.f32.mrb[21].mxu1 }
0x1e15   :  { %v2496_v57 = vmul.f32 -1.442695, %v2213_v42 }
0x1e17   :  { %v3157_v5 = vpop.eup %3156 }
0x1e18   :  { %2027 = vrot.lane.b32.xlu0 %v3157_v5, %s3316_s28 }
0x1e19   :  { %v3159_v28 = vpop.eup %3158 }
0x1e1a   :  { %v2022_v29 = vadd.f32 1.0, %v3159_v28 }
0x1e1c   :  { %3160 = vrcp.f32 %v2022_v29 }
0x1e26   :  { %v3161_v7 = vpop.eup %3160 }
0x1e27   :  { %v2031_v32 = vsub.f32 1.0, %v3161_v7 }
0x1e29   :  { %v2032_v30 = vmul.f32 %v2031_v32, %v1943_v21 }
0x1e8a   :  { %v2028_v33 = vpop.permute.xlu0 %2027 }
0x1e8b   :  { %v2030_v34 = vmul.f32 %v3161_v7, %v2028_v33 }
0x1e8d   :  { %v2033_v35 = vadd.f32 %v2032_v30, %v2030_v34 }
0x1e8f   :  { %2040 = vrot.lane.b32.xlu1 %v2033_v35, %s3317_s29 }
0x1e93   :  { %2034 = vrot.lane.b32.xlu1 %v1943_v21, %s3318_s9 }
0x1f01   :  { %v2041_v36 = vpop.permute.xlu1 %2040 }
0x1f02   :  { %2850 = vmatmul.mubr.msk.f32.vlgmr.msra.gmra.mrb[20].mxu0 %vm104_vm1, %v2041_v36 }
0x1f03   :  { %3019 = vmatpush3.bf16.msra.mxu0 %v3457_v16  ;;  %2871 = vmatprep.mubr.msk.f32.mxu0 %vm3314_vm0, %v3315_v1 }
0x1f04   :  { %3020 = vmatprep.subr.bf16.mxu0 %v3313_v0 }
0x1f05   :  { %v2035_v50 = vpop.permute.xlu1 %2034 }
0x1f06   :  { %v2037_v51 = vmul.f32 %v2035_v50, %v2031_v32 }
0x1f07   :  { %3022 = vmatpush3.bf16.msra.mxu0 %v3460_v18 }
0x1f08   :  { %v2038_v53 = vadd.f32 %v2037_v51, %v2030_v34 }
0x1fd5   :  { %v2110_v37 = vpop.f32.mrb[20].mxu0 }
0x1fd6   :  { %v2111_v39 = vadd.f32 %v3508_v52, %v2110_v37  ;;  %v2851_v38 = vpop.f32.mrb[21].mxu0 }
0x1fd8   :  { %3162 = vtanh.f32 %v2111_v39  ;;  %v2494_v0 = vmul.f32 -1.442695, %v2111_v39 }
0x1fd9   :  { %3164 = vtanh.f32 %v2213_v42 }
0x1fda   :  { %3166 = vpow2.f32 %v2494_v0 }
0x1fe2   :  { %v3163_v16 = vpop.eup %3162 }
0x1fe3   :  { %2122 = vrot.lane.b32.xlu0 %v3163_v16, %s3316_s28  ;;  %v3165_v1 = vpop.eup %3164 }
0x1fe4   :  { %2224 = vrot.lane.b32.xlu1 %v3165_v1, %s3316_s28  ;;  %v3167_v18 = vpop.eup %3166 }
0x1fe5   :  { %v2117_v52 = vadd.f32 1.0, %v3167_v18 }
0x1fe7   :  { %3168 = vrcp.f32 %v2117_v52 }
0x1fe8   :  { %3170 = vpow2.f32 %v2496_v57 }
0x1ff1   :  { %v3169_v44 = vpop.eup %3168 }
0x1ff2   :  { %v2126_v45 = vsub.f32 1.0, %v3169_v44  ;;  %v3171_v58 = vpop.eup %3170 }
0x1ff3   :  { %v2219_v9 = vadd.f32 1.0, %v3171_v58 }
0x1ff4   :  { %v2127_v48 = vmul.f32 %v2126_v45, %v2033_v35 }
0x1ff5   :  { %3172 = vrcp.f32 %v2219_v9 }
0x1fff   :  { %v3173_v59 = vpop.eup %3172 }
0x2000   :  { %v2228_v61 = vsub.f32 1.0, %v3173_v59 }
0x2055   :  { %v2123_v46 = vpop.permute.xlu0 %2122 }
0x2056   :  { %v2125_v47 = vmul.f32 %v3169_v44, %v2123_v46  ;;  %v2225_v60 = vpop.permute.xlu1 %2224 }
0x2057   :  { %v2227_v2 = vmul.f32 %v3173_v59, %v2225_v60 }
0x2058   :  { %v2128_v49 = vadd.f32 %v2127_v48, %v2125_v47 }
0x205a   :  { %2130 = vrot.lane.b32.xlu0 %v2128_v49, %s3318_s9 }
0x20cc   :  { %v2131_v54 = vpop.permute.xlu0 %2130 }
0x20cd   :  { %v2133_v55 = vadd.f32 %v2131_v54, %v2038_v53 }
0x20cf   :  { %v2134_v56 = vmul.f32 0.5, %v2133_v55 }
0x20d1   :  { %2229 = vrot.lane.b32.xlu0 %v2134_v56, %s3318_s9 }
0x2143   :  { %v2230_v62 = vpop.permute.xlu0 %2229 }
0x2144   :  { %v2232_v6 = vmul.f32 %v2230_v62, %v2228_v61 }
0x2146   :  { %v2233_v10 = vadd.f32 %v2232_v6, %v2227_v2 }
0x2148   :  { %2235 = vrot.lane.b32.xlu1 %v2233_v10, %s3317_s29 }
0x21ba   :  { %v2236_v11 = vpop.permute.xlu1 %2235 }
0x21bb   :  { %2872 = vmatmul.mubr.msk.f32.vlgmr.msra.gmra.mrb[22].mxu0 %vm104_vm1, %v2236_v11 }
0x228e   :  { %v2305_v13 = vpop.f32.mrb[22].mxu0 }
0x228f   :  { %v2306_v14 = vadd.f32 %v3705_v24, %v2305_v13  ;;  %v2873_v15 = vpop.f32.mrb[23].mxu0 }
0x2291   :  { %3174 = vtanh.f32 %v2306_v14  ;;  %v2498_v20 = vmul.f32 -1.442695, %v2306_v14 }
0x2293   :  { %3176 = vpow2.f32 %v2498_v20 }
0x229b   :  { %v3175_v19 = vpop.eup %3174 }
0x229c   :  { %2317 = vrot.lane.b32.xlu0 %v3175_v19, %s3316_s28 }
0x229d   :  { %v3177_v21 = vpop.eup %3176 }
0x229e   :  { %v2312_v22 = vadd.f32 1.0, %v3177_v21 }
0x22a0   :  { %3178 = vrcp.f32 %v2312_v22 }
0x22aa   :  { %v3179_v23 = vpop.eup %3178 }
0x22ab   :  { %v2321_v25 = vsub.f32 1.0, %v3179_v23 }
0x22ad   :  { %v2322_v27 = vmul.f32 %v2321_v25, %v2233_v10 }
0x230e   :  { %v2318_v26 = vpop.permute.xlu0 %2317 }
0x230f   :  { %v2320_v5 = vmul.f32 %v3179_v23, %v2318_v26 }
0x2311   :  { %v2323_v28 = vadd.f32 %v2322_v27, %v2320_v5 }
0x2313   :  { %2330 = vrot.lane.b32.xlu1 %v2323_v28, %s3317_s29 }
0x2317   :  { %2324 = vrot.lane.b32.xlu1 %v2233_v10, %s3318_s9 }
0x231b   :  { %397 = vrot.lane.b32.xlu1 %v3515_v17, %s3316_s28 }
0x231f   :  { %976 = vrot.lane.b32.xlu1 %v3585_v8, %s3316_s28 }
0x2323   :  { %1556 = vrot.lane.b32.xlu1 %v3655_v3, %s3316_s28  ;;  %v3188_v3 = vld [vmem:[%s3786_s6] ss:$0 sm:$0xff]  ;;  %s3319_s6 = smov [#allocation10]  }
0x2324   :  { %s2436_s27 = sshll.u32 %s3319_s6, 4  ;;  %s2437_s27 = int_to_ptr.vmem [resolvable:$true] %s2436_s27 }
0x2325   :  { %s3277_s17 = scalar_lea.vmem %s2437_s27, 1024  ;;  %p3282_p5 = scmp.lt.s32.totalorder %s2437_s27, %s2437_s27 }
0x2326   :  { %p3278_p4 = scmp.ne.s32.totalorder %s2437_s27, %s3277_s17  ;;  %p3283_p6 = scmp.lt.s32.totalorder %s3277_s17, %s3277_s17 }
0x2327   :  { %2136 = vrot.lane.b32.xlu1 %v2134_v56, %s3316_s28 }
0x2328   :  { %p3284_p7 = por %p3283_p6, %p3282_p5 }
0x232a   :  { %p3285_p8 = pnand %p3284_p7, %p3278_p4 }
0x2385   :  { %v2331_v24 = vpop.permute.xlu1 %2330 }
0x2386   :  { %2883 = vmatmul.mubr.msk.f32.vlgmr.msra.gmra.mrb[22].mxu1 %vm104_vm1, %v2331_v24 }
0x2389   :  { %v2325_v29 = vpop.permute.xlu1 %2324 }
0x238a   :  { %v2327_v16 = vmul.f32 %v2325_v29, %v2321_v25 }
0x238c   :  { %v2328_v1 = vadd.f32 %v2327_v16, %v2320_v5 }
0x238d   :  { %v398_v7 = vpop.permute.xlu1 %397 }
0x238e   :  { %400 = vst.msk [vmem:[#allocation10] sm:$0xff] %vm104_vm1, %v398_v7 }
0x2391   :  { %v977_v31 = vpop.permute.xlu1 %976 }
0x2392   :  { %980 = vst.msk [vmem:[#allocation10 + $0x10] sm:$0xff] %vm104_vm1, %v977_v31 }
0x2395   :  { %v1557_v32 = vpop.permute.xlu1 %1556 }
0x2396   :  { %1560 = vst.msk [vmem:[#allocation10 + $0x20] sm:$0xff] %vm104_vm1, %v1557_v32 }
0x2399   :  { %v2137_v17 = vpop.permute.xlu1 %2136 }
0x239a   :  { %2140 = vst.msk [vmem:[#allocation10 + $0x30] sm:$0xff] %vm104_vm1, %v2137_v17 }
0x2459   :  { %v2400_v8 = vpop.f32.mrb[22].mxu1 }
0x245a   :  { %v2401_v33 = vadd.f32 %v3188_v3, %v2400_v8  ;;  %v2884_v34 = vpop.f32.mrb[23].mxu1 }
0x245c   :  { %3180 = vtanh.f32 %v2401_v33  ;;  %v2500_v35 = vmul.f32 -1.442695, %v2401_v33 }
0x245e   :  { %3182 = vpow2.f32 %v2500_v35 }
0x2466   :  { %v3181_v30 = vpop.eup %3180 }
0x2467   :  { %2412 = vrot.lane.b32.xlu0 %v3181_v30, %s3316_s28 }
0x2468   :  { %v3183_v36 = vpop.eup %3182 }
0x2469   :  { %v2407_v37 = vadd.f32 1.0, %v3183_v36 }
0x246b   :  { %3184 = vrcp.f32 %v2407_v37 }
0x2475   :  { %v3185_v39 = vpop.eup %3184 }
0x2476   :  { %v2416_v38 = vsub.f32 1.0, %v3185_v39 }
0x2478   :  { %v2417_v42 = vmul.f32 %v2416_v38, %v2323_v28 }
0x24d9   :  { %v2413_v40 = vpop.permute.xlu0 %2412 }
0x24da   :  { %v2415_v41 = vmul.f32 %v3185_v39, %v2413_v40 }
0x24dc   :  { %v2418_v43 = vadd.f32 %v2417_v42, %v2415_v41 }
0x24de   :  { %2420 = vrot.lane.b32.xlu0 %v2418_v43, %s3318_s9 }
0x24e2   :  { %686 = vrot.lane.b32.xlu0 %v3550_v12, %s3316_s28 }
0x24e6   :  { %1266 = vrot.lane.b32.xlu0 %v3620_v4, %s3316_s28 }
0x24ea   :  { %1846 = vrot.lane.b32.xlu0 %v3690_v63, %s3316_s28 }
0x2550   :  { %v2421_v0 = vpop.permute.xlu0 %2420 }
0x2551   :  { %v2423_v18 = vadd.f32 %v2421_v0, %v2328_v1 }
0x2553   :  { %v2424_v52 = vmul.f32 0.5, %v2423_v18 }
0x2554   :  { %v687_v44 = vpop.permute.xlu0 %686 }
0x2555   :  { %690 = vst.msk [vmem:[#allocation10 + $0x8] sm:$0xff] %vm104_vm1, %v687_v44  ;;  %2426 = vrot.lane.b32.xlu0 %v2424_v52, %s3316_s28 }
0x2558   :  { %v1267_v45 = vpop.permute.xlu0 %1266 }
0x2559   :  { %1270 = vst.msk [vmem:[#allocation10 + $0x18] sm:$0xff] %vm104_vm1, %v1267_v45 }
0x255c   :  { %v1847_v12 = vpop.permute.xlu0 %1846 }
0x255d   :  { %1850 = vst.msk [vmem:[#allocation10 + $0x28] sm:$0xff] %vm104_vm1, %v1847_v12 }
0x25c7   :  { %v2427_v4 = vpop.permute.xlu0 %2426 }
0x25c8   :  { %2430 = vst.msk [vmem:[#allocation10 + $0x38] sm:$0xff] %vm104_vm1, %v2427_v4 }
0x25c9   :  { %3288 = shalt.err (!%p3285_p8)
}
0x25ca   :  { %s3289_s20 = scalar_lea.hbm %s3787_s7, 1024 }
0x25cb   :  { %p3290_p9 = scmp.ne.s32.totalorder %s3787_s7, %s3289_s20  ;;  %p3293_p10 = scmp.lt.u32.totalorder %s3289_s20, %s3787_s7 }
0x25cd   :  { %p3295_p11 = pnand %p3293_p10, %p3290_p9 }
0x25cf   :  { %3298 = shalt.err (!%p3295_p11)
}
0x25d0   :  { %2442 = dma.vmem_to_hbm [thread:$0]  %s2437_s27, 1024, %s3787_s7, [#allocation4], %s3309_s13, %s3309_s13, %s3310_s14  }
0x25d1   :  { %3305 = dma.done.wait [#allocation4], 1024  }
0x25d2   :  { %3306 = vsyncadd [#allocation4], 4294966272 }
0x25d3   :  { %2446 = vsyncpa [#allocation3], 1 }
0x25d4   :  { %2447 = vsyncpa [#allocation6], 1 }
0x25d5   :  { %2448 = vsyncpa [#allocation9], 1 }
0x25d6   :  { %2449 = vsyncpa [#allocation4], 1 }

</bundles_post_ra>
